<compile_context>
chip_gen: v6e
topology: v6e:2x2x1
jax: 0.10.0
libtpu: 0.0.40
codegen_flags: <defaults>
</compile_context>

<pallas_src>
import functools
import math

import jax
import jax.numpy as jnp
from jax import lax
from jax.experimental import pallas as pl
from jax.experimental.pallas import tpu as pltpu


def _round_up(x, m):
    return (x + m - 1) // m * m


# ---------------------------------------------------------------------------
# Fused decode kernel. PyTorch LSTM gate order: i | f | g | o.
# grid = (pass, vocab_tile); both axes are "arbitrary" (carried VMEM state).
# ---------------------------------------------------------------------------
def _lstm_decode_kernel(*refs, first_iteration, seq_len, batch_p, hidden_size,
                        vocab_size, tile_v):
    if first_iteration:
        (emb_ref, hid_ref, wp_ref, bp_ref,
         wih_ref, bg_ref, whh_ref, wv_ref,
         vdist_ref, h_out_ref, c_out_ref,
         gi_scr, h_scr, c_scr, logits_scr, m_scr, l_scr) = refs
    else:
        (emb_ref, h0_ref, c0_ref,
         wih_ref, bg_ref, whh_ref, wv_ref,
         vdist_ref, h_out_ref, c_out_ref,
         gi_scr, h_scr, c_scr, logits_scr, m_scr, l_scr) = refs

    H, T, Bp, TV = hidden_size, seq_len, batch_p, tile_v
    p = pl.program_id(0)      # 0: recurrence + per-tile logsumexp, 1: normalize/write
    j = pl.program_id(1)      # vocab tile index

    # ------- grid step (0,0): hidden_proj (optional) + full LSTM recurrence ------
    @pl.when(jnp.logical_and(p == 0, j == 0))
    def _recurrence():
        if first_iteration:
            # hidden_proj: Linear(input_size -> hidden_size); h0 == c0.
            hp = (jnp.dot(hid_ref[...], wp_ref[...],
                          preferred_element_type=jnp.float32) + bp_ref[...])
            h_init, c_init = hp, hp
        else:
            h_init, c_init = h0_ref[...], c0_ref[...]

        # cuDNN-style hoist: input-side gate matmul for ALL timesteps at once,
        # bf16 operands -> f32 accumulation, fused (b_ih + b_hh) bias.
        # TODO(synk): for large T, chunk this matmul over T-blocks so gi_scr
        # (T*Bp*4H*4 bytes) stays bounded instead of materializing every step.
        gi_scr[...] = (jnp.dot(emb_ref[...], wih_ref[...],
                               preferred_element_type=jnp.float32) + bg_ref[...])

        def step_fn(t, carry):
            h, c = carry
            row0 = t * Bp
            if not isinstance(row0, int):
                row0 = pl.multiple_of(row0, Bp)
            # Serial path: one small (Bp,H)x(H,4H) bf16 MXU dot per step.
            # (At Bp=8 this is latency-bound / <6% MXU row occupancy; only a
            #  larger effective batch improves it — no further tiling here.)
            gates = gi_scr[pl.ds(row0, Bp), :] + jnp.dot(
                h.astype(jnp.bfloat16), whh_ref[...],
                preferred_element_type=jnp.float32)
            i_g = jax.nn.sigmoid(gates[:, 0 * H:1 * H])
            f_g = jax.nn.sigmoid(gates[:, 1 * H:2 * H])
            g_g = jnp.tanh(gates[:, 2 * H:3 * H])
            o_g = jax.nn.sigmoid(gates[:, 3 * H:4 * H])
            c = f_g * c + i_g * g_g
            h = o_g * jnp.tanh(c)
            return h, c

        if T <= 16:
            # Small fixed trip count: full static unroll (LLO visibility).
            h, c = h_init, c_init
            for t in range(T):
                h, c = step_fn(t, (h, c))
        else:
            # Larger T: bounded live ranges with modest unroll.
            h, c = lax.fori_loop(0, T, step_fn, (h_init, c_init), unroll=8)

        h_scr[...] = h
        c_scr[...] = c
        h_out_ref[...] = h
        c_out_ref[...] = c
        m_scr[...] = jnp.full_like(m_scr, -jnp.inf)
        l_scr[...] = jnp.zeros_like(l_scr)

    # ------- pass 0: vocab-tile logits + online logsumexp accumulation -------
    @pl.when(p == 0)
    def _stats():
        logits = jnp.dot(h_scr[...].astype(jnp.bfloat16), wv_ref[...],
                         preferred_element_type=jnp.float32)
        # Mask vocab-padding columns so they never contribute to the logsumexp.
        col = j * TV + lax.broadcasted_iota(jnp.int32, (Bp, TV), 1)
        logits = jnp.where(col < vocab_size, logits, -jnp.inf)
        logits_scr[j] = logits
        m_prev = m_scr[...]
        m_new = jnp.maximum(m_prev, jnp.max(logits, axis=-1, keepdims=True))
        l_scr[...] = (l_scr[...] * jnp.exp(m_prev - m_new)
                      + jnp.sum(jnp.exp(logits - m_new), axis=-1, keepdims=True))
        m_scr[...] = m_new

    # ------- pass 1: normalize and write the lane-dense output tile -------
    @pl.when(p == 1)
    def _write():
        lse = m_scr[...] + jnp.log(l_scr[...])
        vdist_ref[...] = logits_scr[j] - lse


# ---------------------------------------------------------------------------
# Wrapper
# ---------------------------------------------------------------------------
def defmod_forward(params, sequence, hidden, is_first_iteration=True, tile_v=512):
    V, H = params["v_proj_w"].shape                      # torch layout (out=V, in=H)
    Din = params["embedding"].shape[1]
    assert H % 128 == 0, "H must be a multiple of 128: gate slices must stay lane-tile aligned"
    assert tile_v % 128 == 0

    # Embedding lookup (bf16 table halves gather bytes; MXU wants bf16 anyway).
    # TODO(synk): fold the gather into the kernel (scalar-prefetch `sequence` +
    # per-row DMAs of the table) to avoid materializing embs in HBM.
    emb_bf16 = params["embedding"].astype(jnp.bfloat16)
    embs = jnp.take(emb_bf16, sequence, axis=0)          # (T, B, Din) bf16
    T, B, _ = embs.shape
    Bp = _round_up(B, 8)                                 # sublane-align batch
    if Bp != B:
        embs = jnp.pad(embs, ((0, 0), (0, Bp - B), (0, 0)))
    embs2d = embs.reshape(T * Bp, Din)

    # bf16 MXU operands; biases / accumulation / gate & softmax math stay f32.
    wih_f = params["lstm_w_ih"].T.astype(jnp.bfloat16)   # (Din, 4H) gates i|f|g|o
    whh_f = params["lstm_w_hh"].T.astype(jnp.bfloat16)   # (H,   4H)
    b_g = (params["lstm_b_ih"] + params["lstm_b_hh"])[None, :].astype(jnp.float32)
    wv = params["v_proj_w"].T.astype(jnp.bfloat16)       # (H, V)

    TV = min(tile_v, _round_up(V, 128))                  # vocab tile width
    Vp = _round_up(V, TV)
    NV = Vp // TV
    if Vp != V:
        wv = jnp.pad(wv, ((0, 0), (0, Vp - V)))

    out_shape = (jax.ShapeDtypeStruct((Bp, Vp), jnp.float32),
                 jax.ShapeDtypeStruct((Bp, H), jnp.float32),
                 jax.ShapeDtypeStruct((Bp, H), jnp.float32))
    out_specs = [
        pl.BlockSpec((Bp, TV), lambda p, j: (0, j * p)),   # written only in pass 1
        pl.BlockSpec((Bp, H), lambda p, j: (0, 0)),
        pl.BlockSpec((Bp, H), lambda p, j: (0, 0)),
    ]
    scratch = [
        pltpu.VMEM((T * Bp, 4 * H), jnp.float32),    # hoisted input-gate activations
        pltpu.VMEM((Bp, H), jnp.float32),            # h (persists across grid steps)
        pltpu.VMEM((Bp, H), jnp.float32),            # c
        pltpu.VMEM((NV, Bp, TV), jnp.float32),       # per-tile logits (pass0 -> pass1)
        pltpu.VMEM((Bp, 1), jnp.float32),            # running max   (online logsumexp)
        pltpu.VMEM((Bp, 1), jnp.float32),            # running sum
    ]

    if is_first_iteration:
        h_in = hidden[0]                                  # (B, Din)
        if Bp != B:
            h_in = jnp.pad(h_in, ((0, Bp - B), (0, 0)))
        wp = params["hidden_proj_w"].T.astype(jnp.bfloat16)   # (Din, H)
        bp = params["hidden_proj_b"][None, :].astype(jnp.float32)
        in_specs = [
            pl.BlockSpec((T * Bp, Din), lambda p, j: (0, 0)),
            pl.BlockSpec((Bp, Din), lambda p, j: (0, 0)),
            pl.BlockSpec((Din, H), lambda p, j: (0, 0)),
            pl.BlockSpec((1, H), lambda p, j: (0, 0)),
            pl.BlockSpec((Din, 4 * H), lambda p, j: (0, 0)),
            pl.BlockSpec((1, 4 * H), lambda p, j: (0, 0)),
            pl.BlockSpec((H, 4 * H), lambda p, j: (0, 0)),
            pl.BlockSpec((H, TV), lambda p, j: (0, j * (1 - p))),  # streamed in pass 0
        ]
        args = (embs2d, h_in.astype(jnp.bfloat16), wp, bp, wih_f, b_g, whh_f, wv)
    else:
        h0 = hidden[0][0]                                 # (B, H)
        c0 = hidden[1][0]
        if Bp != B:
            h0 = jnp.pad(h0, ((0, Bp - B), (0, 0)))
            c0 = jnp.pad(c0, ((0, Bp - B), (0, 0)))
        in_specs = [
            pl.BlockSpec((T * Bp, Din), lambda p, j: (0, 0)),
            pl.BlockSpec((Bp, H), lambda p, j: (0, 0)),
            pl.BlockSpec((Bp, H), lambda p, j: (0, 0)),
            pl.BlockSpec((Din, 4 * H), lambda p, j: (0, 0)),
            pl.BlockSpec((1, 4 * H), lambda p, j: (0, 0)),
            pl.BlockSpec((H, 4 * H), lambda p, j: (0, 0)),
            pl.BlockSpec((H, TV), lambda p, j: (0, j * (1 - p))),
        ]
        args = (embs2d, h0.astype(jnp.float32), c0.astype(jnp.float32),
                wih_f, b_g, whh_f, wv)

    # Advisory cost estimate for the XLA scheduler.
    flops = 2 * (Bp * Din * H + T * Bp * Din * 4 * H
                 + T * Bp * H * 4 * H + Bp * H * Vp)
    transcendentals = 5 * T * Bp * H + 2 * Bp * Vp
    bytes_accessed = (sum(int(a.size) * a.dtype.itemsize for a in args)
                      + Bp * Vp * 4 + 2 * Bp * H * 4)
    cost = pl.CostEstimate(flops=int(flops), transcendentals=int(transcendentals),
                           bytes_accessed=int(bytes_accessed))

    # Explicit VMEM budget: actual residency (weights once + double-buffered wv
    # tiles + scratch) with headroom, capped below v7x's 64 MiB physical VMEM.
    vmem_bytes = (int(embs2d.size) * 2 + int(wih_f.size) * 2 + int(whh_f.size) * 2
                  + 2 * H * TV * 2                 # double-buffered wv tiles (bf16)
                  + int(b_g.size) * 4
                  + T * Bp * 4 * H * 4             # gi_scr
                  + NV * Bp * TV * 4               # logits_scr
                  + 2 * Bp * TV * 4                # vdist output tiles
                  + 6 * Bp * H * 4                 # h/c scratch + state outputs
                  + Bp * Din * 4 + Din * H * 2 + H * 4)   # first-iteration extras
    vmem_limit = int(min(max(2 * vmem_bytes, 16 * 2**20), 48 * 2**20))

    cparams = pltpu.CompilerParams(
        # Both axes carry state in VMEM scratch (h/c, online logsumexp) so they
        # stay "arbitrary".
        # TODO(synk): for v7x dual-TC, split the vocab projection into its own
        # pallas_call with a "parallel" V axis (recurrence stays on one core).
        dimension_semantics=("arbitrary", "arbitrary"),
        vmem_limit_bytes=vmem_limit,
    )

    kern = functools.partial(_lstm_decode_kernel, first_iteration=is_first_iteration,
                             seq_len=T, batch_p=Bp, hidden_size=H,
                             vocab_size=V, tile_v=TV)
    grid_spec = pltpu.PrefetchScalarGridSpec(
        num_scalar_prefetch=0, grid=(2, NV),
        in_specs=in_specs, out_specs=out_specs, scratch_shapes=scratch)

    v_dist, h_n, c_n = pl.pallas_call(
        kern, out_shape=out_shape, grid_spec=grid_spec,
        compiler_params=cparams, cost_estimate=cost)(*args)

    return v_dist[:B, :V], (h_n[None, :B], c_n[None, :B])


# ---------------------------------------------------------------------------
# Deterministic parameter init (mirrors the module's xavier/zeros/ones scheme).
# ---------------------------------------------------------------------------
def init_params(key, vocab_size, input_size, hidden_size):
    def xavier(k, shape):  # torch (out, in) convention
        fan_out, fan_in = shape
        bound = math.sqrt(6.0 / (fan_in + fan_out))
        return jax.random.uniform(k, shape, jnp.float32, -bound, bound)

    ks = jax.random.split(key, 5)
    return {
        "embedding":     xavier(ks[0], (vocab_size, input_size)),
        "hidden_proj_w": xavier(ks[1], (hidden_size, input_size)),
        "hidden_proj_b": jnp.zeros((hidden_size,), jnp.float32),
        "lstm_w_ih":     xavier(ks[2], (4 * hidden_size, input_size)),
        "lstm_w_hh":     xavier(ks[3], (4 * hidden_size, hidden_size)),
        "lstm_b_ih":     jnp.zeros((4 * hidden_size,), jnp.float32),
        "lstm_b_hh":     jnp.zeros((4 * hidden_size,), jnp.float32),
        # ln_f is initialized (ones/zeros) but unused in forward, matching the module.
        "ln_f_w":        jnp.ones((hidden_size,), jnp.float32),
        "ln_f_b":        jnp.zeros((hidden_size,), jnp.float32),
        "v_proj_w":      xavier(ks[4], (vocab_size, hidden_size)),
    }


# ---------------------------------------------------------------------------
# Pure-JAX reference. matmul_dtype=jnp.bfloat16 mirrors the kernel's bf16 MXU
# operands (f32 accumulation); jnp.float32 gives the exact module math.
# ---------------------------------------------------------------------------
def reference_forward(params, sequence, hidden, is_first_iteration=True,
                      matmul_dtype=jnp.float32):
    H = params["v_proj_w"].shape[1]

    def mm(a, b):
        return jnp.dot(a.astype(matmul_dtype), b.astype(matmul_dtype),
                       preferred_element_type=jnp.float32)

    embs = params["embedding"][sequence]                  # (T, B, Din)
    if is_first_iteration:
        hp = mm(hidden[0], params["hidden_proj_w"].T) + params["hidden_proj_b"]
        h, c = hp, hp
    else:
        h, c = hidden[0][0], hidden[1][0]
    wih, whh = params["lstm_w_ih"], params["lstm_w_hh"]
    bih, bhh = params["lstm_b_ih"], params["lstm_b_hh"]
    for t in range(embs.shape[0]):
        x = embs[t]
        gates = mm(x, wih.T) + bih + mm(h, whh.T) + bhh
        i_g = jax.nn.sigmoid(gates[:, 0 * H:1 * H])
        f_g = jax.nn.sigmoid(gates[:, 1 * H:2 * H])
        g_g = jnp.tanh(gates[:, 2 * H:3 * H])
        o_g = jax.nn.sigmoid(gates[:, 3 * H:4 * H])
        c = f_g * c + i_g * g_g
        h = o_g * jnp.tanh(c)
    logits = mm(h, params["v_proj_w"].T)
    return jax.nn.log_softmax(logits, axis=1), (h[None], c[None])


if __name__ == "__main__":
    VOCAB, DIN, H = 256, 64, 128   # lane-friendly toy sizes (V, H multiples of 128)
    T, B = 8, 2                    # seq len 8, batch 2 (padded to 8 internally)

    key = jax.random.PRNGKey(0)
    k_par, k_seq, k_hid, k_seq2 = jax.random.split(key, 4)

    params = init_params(k_par, VOCAB, DIN, H)
    sequence = jax.random.randint(k_seq, (T, B), 0, VOCAB, dtype=jnp.int32)   # (T, B)
    hidden0 = jax.random.normal(k_hid, (1, B, DIN), jnp.float32)              # (1, B, Din)

    # --- first decode iteration: raw hidden -> hidden_proj for both h0 and c0 ---
    v_dist, state = defmod_forward(params, sequence, hidden0,
                                   is_first_iteration=True, tile_v=128)
    jax.block_until_ready((v_dist, state))

    v_bf, s_bf = reference_forward(params, sequence, hidden0, True, jnp.bfloat16)
    v_f32, _ = reference_forward(params, sequence, hidden0, True, jnp.float32)
    assert v_dist.shape == (B, VOCAB)
    assert state[0].shape == (1, B, H) and state[1].shape == (1, B, H)
    assert jnp.allclose(v_dist, v_bf, atol=5e-3, rtol=5e-3), "v_dist mismatch (iter 0)"
    assert jnp.allclose(state[0], s_bf[0], atol=5e-3, rtol=5e-3), "h_n mismatch (iter 0)"
    assert jnp.allclose(state[1], s_bf[1], atol=5e-3, rtol=5e-3), "c_n mismatch (iter 0)"
    assert jnp.allclose(v_dist, v_f32, atol=1e-1, rtol=1e-1), "v_dist drift vs f32 (iter 0)"

    # --- subsequent iteration: hidden is the (h, c) tuple carried forward ---
    sequence2 = jax.random.randint(k_seq2, (T, B), 0, VOCAB, dtype=jnp.int32)
    v_dist2, state2 = defmod_forward(params, sequence2, state,
                                     is_first_iteration=False, tile_v=128)
    jax.block_until_ready((v_dist2, state2))

    v2_bf, s2_bf = reference_forward(params, sequence2, state, False, jnp.bfloat16)
    v2_f32, _ = reference_forward(params, sequence2, state, False, jnp.float32)
    assert jnp.allclose(v_dist2, v2_bf, atol=5e-3, rtol=5e-3), "v_dist mismatch (iter 1)"
    assert jnp.allclose(state2[0], s2_bf[0], atol=5e-3, rtol=5e-3), "h_n mismatch (iter 1)"
    assert jnp.allclose(state2[1], s2_bf[1], atol=5e-3, rtol=5e-3), "c_n mismatch (iter 1)"
    assert jnp.allclose(v_dist2, v2_f32, atol=1e-1, rtol=1e-1), "v_dist drift vs f32 (iter 1)"

    print("KERNEL_OK")
</pallas_src>

<mosaic_0001>
module attributes {stable_mosaic.version = 11 : i64} {
  func.func @_lstm_decode_kernel(%arg0: i32, %arg1: i32, %arg2: memref<64x64xbf16, #tpu.memory_space<vmem>>, %arg3: memref<8x64xbf16, #tpu.memory_space<vmem>>, %arg4: memref<64x128xbf16, #tpu.memory_space<vmem>>, %arg5: memref<1x128xf32, #tpu.memory_space<vmem>>, %arg6: memref<64x512xbf16, #tpu.memory_space<vmem>>, %arg7: memref<1x512xf32, #tpu.memory_space<vmem>>, %arg8: memref<128x512xbf16, #tpu.memory_space<vmem>>, %arg9: memref<128x128xbf16, #tpu.memory_space<vmem>>, %arg10: memref<8x128xf32, #tpu.memory_space<vmem>>, %arg11: memref<8x128xf32, #tpu.memory_space<vmem>>, %arg12: memref<8x128xf32, #tpu.memory_space<vmem>>, %arg13: memref<64x512xf32, #tpu.memory_space<vmem>>, %arg14: memref<8x128xf32, #tpu.memory_space<vmem>>, %arg15: memref<8x128xf32, #tpu.memory_space<vmem>>, %arg16: memref<2x8x128xf32, #tpu.memory_space<vmem>>, %arg17: memref<8x1xf32, #tpu.memory_space<vmem>>, %arg18: memref<8x1xf32, #tpu.memory_space<vmem>>) attributes {dimension_semantics = [#tpu.dimension_semantics<arbitrary>, #tpu.dimension_semantics<arbitrary>], iteration_bounds = array<i64: 2, 2>, scalar_prefetch = 0 : i64, scratch_operands = 6 : i64, tpu.core_type = #tpu.core_type<tc>, window_params = [{pipeline_mode = #tpu.pipeline_mode<synchronous>, transform_indices = @transform_0, window_bounds = array<i64: 64, 64>}, {pipeline_mode = #tpu.pipeline_mode<synchronous>, transform_indices = @transform_1, window_bounds = array<i64: 8, 64>}, {pipeline_mode = #tpu.pipeline_mode<synchronous>, transform_indices = @transform_2, window_bounds = array<i64: 64, 128>}, {pipeline_mode = #tpu.pipeline_mode<synchronous>, transform_indices = @transform_3, window_bounds = array<i64: 1, 128>}, {pipeline_mode = #tpu.pipeline_mode<synchronous>, transform_indices = @transform_4, window_bounds = array<i64: 64, 512>}, {pipeline_mode = #tpu.pipeline_mode<synchronous>, transform_indices = @transform_5, window_bounds = array<i64: 1, 512>}, {pipeline_mode = #tpu.pipeline_mode<synchronous>, transform_indices = @transform_6, window_bounds = array<i64: 128, 512>}, {transform_indices = @transform_7, window_bounds = array<i64: 128, 128>}, {transform_indices = @transform_8, window_bounds = array<i64: 8, 128>}, {pipeline_mode = #tpu.pipeline_mode<synchronous>, transform_indices = @transform_9, window_bounds = array<i64: 8, 128>}, {pipeline_mode = #tpu.pipeline_mode<synchronous>, transform_indices = @transform_10, window_bounds = array<i64: 8, 128>}]} {
    %c0_i32 = arith.constant 0 : i32
    %0 = arith.cmpi eq, %arg0, %c0_i32 : i32
    %c0_i32_0 = arith.constant 0 : i32
    %1 = arith.cmpi eq, %arg1, %c0_i32_0 : i32
    %2 = arith.andi %0, %1 : i1
    %3 = arith.extui %2 : i1 to i32
    %c0_i32_1 = arith.constant 0 : i32
    %4 = arith.cmpi ne, %3, %c0_i32_1 : i32
    scf.if %4 {
      %c0 = arith.constant 0 : index
      %c0_5 = arith.constant 0 : index
      %11 = vector.load %arg3[%c0, %c0_5] : memref<8x64xbf16, #tpu.memory_space<vmem>>, vector<8x64xbf16>
      %c0_6 = arith.constant 0 : index
      %c0_7 = arith.constant 0 : index
      %12 = vector.load %arg4[%c0_6, %c0_7] : memref<64x128xbf16, #tpu.memory_space<vmem>>, vector<64x128xbf16>
      %cst = arith.constant dense<0.000000e+00> : vector<8x128xf32>
      %13 = tpu.matmul %11, %12, %cst {dimension_numbers = #tpu.dot_dimension_numbers<[1], [0], [0], [1], [0, 0, 1, 1], [], []>} : vector<8x64xbf16>, vector<64x128xbf16>, vector<8x128xf32> -> vector<8x128xf32>
      %c0_8 = arith.constant 0 : index
      %c0_9 = arith.constant 0 : index
      %14 = vector.load %arg5[%c0_8, %c0_9] : memref<1x128xf32, #tpu.memory_space<vmem>>, vector<1x128xf32>
      %15 = vector.broadcast %14 : vector<1x128xf32> to vector<8x128xf32>
      %16 = arith.addf %13, %15 : vector<8x128xf32>
      %c0_10 = arith.constant 0 : index
      %c0_11 = arith.constant 0 : index
      %17 = vector.load %arg2[%c0_10, %c0_11] : memref<64x64xbf16, #tpu.memory_space<vmem>>, vector<64x64xbf16>
      %c0_12 = arith.constant 0 : index
      %c0_13 = arith.constant 0 : index
      %18 = vector.load %arg6[%c0_12, %c0_13] : memref<64x512xbf16, #tpu.memory_space<vmem>>, vector<64x512xbf16>
      %cst_14 = arith.constant dense<0.000000e+00> : vector<64x512xf32>
      %19 = tpu.matmul %17, %18, %cst_14 {dimension_numbers = #tpu.dot_dimension_numbers<[1], [0], [0], [1], [0, 0, 1, 1], [], []>} : vector<64x64xbf16>, vector<64x512xbf16>, vector<64x512xf32> -> vector<64x512xf32>
      %c0_15 = arith.constant 0 : index
      %c0_16 = arith.constant 0 : index
      %20 = vector.load %arg7[%c0_15, %c0_16] : memref<1x512xf32, #tpu.memory_space<vmem>>, vector<1x512xf32>
      %21 = vector.broadcast %20 : vector<1x512xf32> to vector<64x512xf32>
      %22 = arith.addf %19, %21 : vector<64x512xf32>
      %c0_17 = arith.constant 0 : index
      %c0_18 = arith.constant 0 : index
      %23 = vector.load %arg13[%c0_17, %c0_18] : memref<64x512xf32, #tpu.memory_space<vmem>>, vector<64x512xf32>
      tpu.vector_store %arg13[%c0_17, %c0_18], %22 {strides = array<i32>} : memref<64x512xf32, #tpu.memory_space<vmem>>, vector<64x512xf32>,
      %c0_19 = arith.constant 0 : index
      %c0_20 = arith.constant 0 : index
      %24 = vector.load %arg13[%c0_19, %c0_20] : memref<64x512xf32, #tpu.memory_space<vmem>>, vector<8x512xf32>
      %25 = arith.truncf %16 : vector<8x128xf32> to vector<8x128xbf16>
      %c0_21 = arith.constant 0 : index
      %c0_22 = arith.constant 0 : index
      %26 = vector.load %arg8[%c0_21, %c0_22] : memref<128x512xbf16, #tpu.memory_space<vmem>>, vector<128x512xbf16>
      %cst_23 = arith.constant dense<0.000000e+00> : vector<8x512xf32>
      %27 = tpu.matmul %25, %26, %cst_23 {dimension_numbers = #tpu.dot_dimension_numbers<[1], [0], [0], [1], [0, 0, 1, 1], [], []>} : vector<8x128xbf16>, vector<128x512xbf16>, vector<8x512xf32> -> vector<8x512xf32>
      %28 = arith.addf %24, %27 : vector<8x512xf32>
      %29 = vector.extract_strided_slice %28 {offsets = [0, 0], sizes = [8, 128], strides = [1, 1]} : vector<8x512xf32> to vector<8x128xf32>
      %30 = arith.negf %29 : vector<8x128xf32>
      %31 = math.exp %30 : vector<8x128xf32>
      %cst_24 = arith.constant 1.000000e+00 : f32
      %32 = vector.broadcast %cst_24 : f32 to vector<8x128xf32>
      %33 = arith.addf %32, %31 : vector<8x128xf32>
      %34 = arith.divf %32, %33 : vector<8x128xf32>
      %35 = vector.extract_strided_slice %28 {offsets = [0, 128], sizes = [8, 128], strides = [1, 1]} : vector<8x512xf32> to vector<8x128xf32>
      %36 = arith.negf %35 : vector<8x128xf32>
      %37 = math.exp %36 : vector<8x128xf32>
      %cst_25 = arith.constant 1.000000e+00 : f32
      %38 = vector.broadcast %cst_25 : f32 to vector<8x128xf32>
      %39 = arith.addf %38, %37 : vector<8x128xf32>
      %40 = arith.divf %38, %39 : vector<8x128xf32>
      %41 = vector.extract_strided_slice %28 {offsets = [0, 256], sizes = [8, 128], strides = [1, 1]} : vector<8x512xf32> to vector<8x128xf32>
      %42 = math.tanh %41 : vector<8x128xf32>
      %43 = vector.extract_strided_slice %28 {offsets = [0, 384], sizes = [8, 128], strides = [1, 1]} : vector<8x512xf32> to vector<8x128xf32>
      %44 = arith.negf %43 : vector<8x128xf32>
      %45 = math.exp %44 : vector<8x128xf32>
      %cst_26 = arith.constant 1.000000e+00 : f32
      %46 = vector.broadcast %cst_26 : f32 to vector<8x128xf32>
      %47 = arith.addf %46, %45 : vector<8x128xf32>
      %48 = arith.divf %46, %47 : vector<8x128xf32>
      %49 = arith.mulf %40, %16 : vector<8x128xf32>
      %50 = arith.mulf %34, %42 : vector<8x128xf32>
      %51 = arith.addf %49, %50 : vector<8x128xf32>
      %52 = math.tanh %51 : vector<8x128xf32>
      %53 = arith.mulf %48, %52 : vector<8x128xf32>
      %c8 = arith.constant 8 : index
      %c0_27 = arith.constant 0 : index
      %54 = vector.load %arg13[%c8, %c0_27] : memref<64x512xf32, #tpu.memory_space<vmem>>, vector<8x512xf32>
      %55 = arith.truncf %53 : vector<8x128xf32> to vector<8x128xbf16>
      %c0_28 = arith.constant 0 : index
      %c0_29 = arith.constant 0 : index
      %56 = vector.load %arg8[%c0_28, %c0_29] : memref<128x512xbf16, #tpu.memory_space<vmem>>, vector<128x512xbf16>
      %cst_30 = arith.constant dense<0.000000e+00> : vector<8x512xf32>
      %57 = tpu.matmul %55, %56, %cst_30 {dimension_numbers = #tpu.dot_dimension_numbers<[1], [0], [0], [1], [0, 0, 1, 1], [], []>} : vector<8x128xbf16>, vector<128x512xbf16>, vector<8x512xf32> -> vector<8x512xf32>
      %58 = arith.addf %54, %57 : vector<8x512xf32>
      %59 = vector.extract_strided_slice %58 {offsets = [0, 0], sizes = [8, 128], strides = [1, 1]} : vector<8x512xf32> to vector<8x128xf32>
      %60 = arith.negf %59 : vector<8x128xf32>
      %61 = math.exp %60 : vector<8x128xf32>
      %cst_31 = arith.constant 1.000000e+00 : f32
      %62 = vector.broadcast %cst_31 : f32 to vector<8x128xf32>
      %63 = arith.addf %62, %61 : vector<8x128xf32>
      %64 = arith.divf %62, %63 : vector<8x128xf32>
      %65 = vector.extract_strided_slice %58 {offsets = [0, 128], sizes = [8, 128], strides = [1, 1]} : vector<8x512xf32> to vector<8x128xf32>
      %66 = arith.negf %65 : vector<8x128xf32>
      %67 = math.exp %66 : vector<8x128xf32>
      %cst_32 = arith.constant 1.000000e+00 : f32
      %68 = vector.broadcast %cst_32 : f32 to vector<8x128xf32>
      %69 = arith.addf %68, %67 : vector<8x128xf32>
      %70 = arith.divf %68, %69 : vector<8x128xf32>
      %71 = vector.extract_strided_slice %58 {offsets = [0, 256], sizes = [8, 128], strides = [1, 1]} : vector<8x512xf32> to vector<8x128xf32>
      %72 = math.tanh %71 : vector<8x128xf32>
      %73 = vector.extract_strided_slice %58 {offsets = [0, 384], sizes = [8, 128], strides = [1, 1]} : vector<8x512xf32> to vector<8x128xf32>
      %74 = arith.negf %73 : vector<8x128xf32>
      %75 = math.exp %74 : vector<8x128xf32>
      %cst_33 = arith.constant 1.000000e+00 : f32
      %76 = vector.broadcast %cst_33 : f32 to vector<8x128xf32>
      %77 = arith.addf %76, %75 : vector<8x128xf32>
      %78 = arith.divf %76, %77 : vector<8x128xf32>
      %79 = arith.mulf %70, %51 : vector<8x128xf32>
      %80 = arith.mulf %64, %72 : vector<8x128xf32>
      %81 = arith.addf %79, %80 : vector<8x128xf32>
      %82 = math.tanh %81 : vector<8x128xf32>
      %83 = arith.mulf %78, %82 : vector<8x128xf32>
      %c16 = arith.constant 16 : index
      %c0_34 = arith.constant 0 : index
      %84 = vector.load %arg13[%c16, %c0_34] : memref<64x512xf32, #tpu.memory_space<vmem>>, vector<8x512xf32>
      %85 = arith.truncf %83 : vector<8x128xf32> to vector<8x128xbf16>
      %c0_35 = arith.constant 0 : index
      %c0_36 = arith.constant 0 : index
      %86 = vector.load %arg8[%c0_35, %c0_36] : memref<128x512xbf16, #tpu.memory_space<vmem>>, vector<128x512xbf16>
      %cst_37 = arith.constant dense<0.000000e+00> : vector<8x512xf32>
      %87 = tpu.matmul %85, %86, %cst_37 {dimension_numbers = #tpu.dot_dimension_numbers<[1], [0], [0], [1], [0, 0, 1, 1], [], []>} : vector<8x128xbf16>, vector<128x512xbf16>, vector<8x512xf32> -> vector<8x512xf32>
      %88 = arith.addf %84, %87 : vector<8x512xf32>
      %89 = vector.extract_strided_slice %88 {offsets = [0, 0], sizes = [8, 128], strides = [1, 1]} : vector<8x512xf32> to vector<8x128xf32>
      %90 = arith.negf %89 : vector<8x128xf32>
      %91 = math.exp %90 : vector<8x128xf32>
      %cst_38 = arith.constant 1.000000e+00 : f32
      %92 = vector.broadcast %cst_38 : f32 to vector<8x128xf32>
      %93 = arith.addf %92, %91 : vector<8x128xf32>
      %94 = arith.divf %92, %93 : vector<8x128xf32>
      %95 = vector.extract_strided_slice %88 {offsets = [0, 128], sizes = [8, 128], strides = [1, 1]} : vector<8x512xf32> to vector<8x128xf32>
      %96 = arith.negf %95 : vector<8x128xf32>
      %97 = math.exp %96 : vector<8x128xf32>
      %cst_39 = arith.constant 1.000000e+00 : f32
      %98 = vector.broadcast %cst_39 : f32 to vector<8x128xf32>
      %99 = arith.addf %98, %97 : vector<8x128xf32>
      %100 = arith.divf %98, %99 : vector<8x128xf32>
      %101 = vector.extract_strided_slice %88 {offsets = [0, 256], sizes = [8, 128], strides = [1, 1]} : vector<8x512xf32> to vector<8x128xf32>
      %102 = math.tanh %101 : vector<8x128xf32>
      %103 = vector.extract_strided_slice %88 {offsets = [0, 384], sizes = [8, 128], strides = [1, 1]} : vector<8x512xf32> to vector<8x128xf32>
      %104 = arith.negf %103 : vector<8x128xf32>
      %105 = math.exp %104 : vector<8x128xf32>
      %cst_40 = arith.constant 1.000000e+00 : f32
      %106 = vector.broadcast %cst_40 : f32 to vector<8x128xf32>
      %107 = arith.addf %106, %105 : vector<8x128xf32>
      %108 = arith.divf %106, %107 : vector<8x128xf32>
      %109 = arith.mulf %100, %81 : vector<8x128xf32>
      %110 = arith.mulf %94, %102 : vector<8x128xf32>
      %111 = arith.addf %109, %110 : vector<8x128xf32>
      %112 = math.tanh %111 : vector<8x128xf32>
      %113 = arith.mulf %108, %112 : vector<8x128xf32>
      %c24 = arith.constant 24 : index
      %c0_41 = arith.constant 0 : index
      %114 = vector.load %arg13[%c24, %c0_41] : memref<64x512xf32, #tpu.memory_space<vmem>>, vector<8x512xf32>
      %115 = arith.truncf %113 : vector<8x128xf32> to vector<8x128xbf16>
      %c0_42 = arith.constant 0 : index
      %c0_43 = arith.constant 0 : index
      %116 = vector.load %arg8[%c0_42, %c0_43] : memref<128x512xbf16, #tpu.memory_space<vmem>>, vector<128x512xbf16>
      %cst_44 = arith.constant dense<0.000000e+00> : vector<8x512xf32>
      %117 = tpu.matmul %115, %116, %cst_44 {dimension_numbers = #tpu.dot_dimension_numbers<[1], [0], [0], [1], [0, 0, 1, 1], [], []>} : vector<8x128xbf16>, vector<128x512xbf16>, vector<8x512xf32> -> vector<8x512xf32>
      %118 = arith.addf %114, %117 : vector<8x512xf32>
      %119 = vector.extract_strided_slice %118 {offsets = [0, 0], sizes = [8, 128], strides = [1, 1]} : vector<8x512xf32> to vector<8x128xf32>
      %120 = arith.negf %119 : vector<8x128xf32>
      %121 = math.exp %120 : vector<8x128xf32>
      %cst_45 = arith.constant 1.000000e+00 : f32
      %122 = vector.broadcast %cst_45 : f32 to vector<8x128xf32>
      %123 = arith.addf %122, %121 : vector<8x128xf32>
      %124 = arith.divf %122, %123 : vector<8x128xf32>
      %125 = vector.extract_strided_slice %118 {offsets = [0, 128], sizes = [8, 128], strides = [1, 1]} : vector<8x512xf32> to vector<8x128xf32>
      %126 = arith.negf %125 : vector<8x128xf32>
      %127 = math.exp %126 : vector<8x128xf32>
      %cst_46 = arith.constant 1.000000e+00 : f32
      %128 = vector.broadcast %cst_46 : f32 to vector<8x128xf32>
      %129 = arith.addf %128, %127 : vector<8x128xf32>
      %130 = arith.divf %128, %129 : vector<8x128xf32>
      %131 = vector.extract_strided_slice %118 {offsets = [0, 256], sizes = [8, 128], strides = [1, 1]} : vector<8x512xf32> to vector<8x128xf32>
      %132 = math.tanh %131 : vector<8x128xf32>
      %133 = vector.extract_strided_slice %118 {offsets = [0, 384], sizes = [8, 128], strides = [1, 1]} : vector<8x512xf32> to vector<8x128xf32>
      %134 = arith.negf %133 : vector<8x128xf32>
      %135 = math.exp %134 : vector<8x128xf32>
      %cst_47 = arith.constant 1.000000e+00 : f32
      %136 = vector.broadcast %cst_47 : f32 to vector<8x128xf32>
      %137 = arith.addf %136, %135 : vector<8x128xf32>
      %138 = arith.divf %136, %137 : vector<8x128xf32>
      %139 = arith.mulf %130, %111 : vector<8x128xf32>
      %140 = arith.mulf %124, %132 : vector<8x128xf32>
      %141 = arith.addf %139, %140 : vector<8x128xf32>
      %142 = math.tanh %141 : vector<8x128xf32>
      %143 = arith.mulf %138, %142 : vector<8x128xf32>
      %c32 = arith.constant 32 : index
      %c0_48 = arith.constant 0 : index
      %144 = vector.load %arg13[%c32, %c0_48] : memref<64x512xf32, #tpu.memory_space<vmem>>, vector<8x512xf32>
      %145 = arith.truncf %143 : vector<8x128xf32> to vector<8x128xbf16>
      %c0_49 = arith.constant 0 : index
      %c0_50 = arith.constant 0 : index
      %146 = vector.load %arg8[%c0_49, %c0_50] : memref<128x512xbf16, #tpu.memory_space<vmem>>, vector<128x512xbf16>
      %cst_51 = arith.constant dense<0.000000e+00> : vector<8x512xf32>
      %147 = tpu.matmul %145, %146, %cst_51 {dimension_numbers = #tpu.dot_dimension_numbers<[1], [0], [0], [1], [0, 0, 1, 1], [], []>} : vector<8x128xbf16>, vector<128x512xbf16>, vector<8x512xf32> -> vector<8x512xf32>
      %148 = arith.addf %144, %147 : vector<8x512xf32>
      %149 = vector.extract_strided_slice %148 {offsets = [0, 0], sizes = [8, 128], strides = [1, 1]} : vector<8x512xf32> to vector<8x128xf32>
      %150 = arith.negf %149 : vector<8x128xf32>
      %151 = math.exp %150 : vector<8x128xf32>
      %cst_52 = arith.constant 1.000000e+00 : f32
      %152 = vector.broadcast %cst_52 : f32 to vector<8x128xf32>
      %153 = arith.addf %152, %151 : vector<8x128xf32>
      %154 = arith.divf %152, %153 : vector<8x128xf32>
      %155 = vector.extract_strided_slice %148 {offsets = [0, 128], sizes = [8, 128], strides = [1, 1]} : vector<8x512xf32> to vector<8x128xf32>
      %156 = arith.negf %155 : vector<8x128xf32>
      %157 = math.exp %156 : vector<8x128xf32>
      %cst_53 = arith.constant 1.000000e+00 : f32
      %158 = vector.broadcast %cst_53 : f32 to vector<8x128xf32>
      %159 = arith.addf %158, %157 : vector<8x128xf32>
      %160 = arith.divf %158, %159 : vector<8x128xf32>
      %161 = vector.extract_strided_slice %148 {offsets = [0, 256], sizes = [8, 128], strides = [1, 1]} : vector<8x512xf32> to vector<8x128xf32>
      %162 = math.tanh %161 : vector<8x128xf32>
      %163 = vector.extract_strided_slice %148 {offsets = [0, 384], sizes = [8, 128], strides = [1, 1]} : vector<8x512xf32> to vector<8x128xf32>
      %164 = arith.negf %163 : vector<8x128xf32>
      %165 = math.exp %164 : vector<8x128xf32>
      %cst_54 = arith.constant 1.000000e+00 : f32
      %166 = vector.broadcast %cst_54 : f32 to vector<8x128xf32>
      %167 = arith.addf %166, %165 : vector<8x128xf32>
      %168 = arith.divf %166, %167 : vector<8x128xf32>
      %169 = arith.mulf %160, %141 : vector<8x128xf32>
      %170 = arith.mulf %154, %162 : vector<8x128xf32>
      %171 = arith.addf %169, %170 : vector<8x128xf32>
      %172 = math.tanh %171 : vector<8x128xf32>
      %173 = arith.mulf %168, %172 : vector<8x128xf32>
      %c40 = arith.constant 40 : index
      %c0_55 = arith.constant 0 : index
      %174 = vector.load %arg13[%c40, %c0_55] : memref<64x512xf32, #tpu.memory_space<vmem>>, vector<8x512xf32>
      %175 = arith.truncf %173 : vector<8x128xf32> to vector<8x128xbf16>
      %c0_56 = arith.constant 0 : index
      %c0_57 = arith.constant 0 : index
      %176 = vector.load %arg8[%c0_56, %c0_57] : memref<128x512xbf16, #tpu.memory_space<vmem>>, vector<128x512xbf16>
      %cst_58 = arith.constant dense<0.000000e+00> : vector<8x512xf32>
      %177 = tpu.matmul %175, %176, %cst_58 {dimension_numbers = #tpu.dot_dimension_numbers<[1], [0], [0], [1], [0, 0, 1, 1], [], []>} : vector<8x128xbf16>, vector<128x512xbf16>, vector<8x512xf32> -> vector<8x512xf32>
      %178 = arith.addf %174, %177 : vector<8x512xf32>
      %179 = vector.extract_strided_slice %178 {offsets = [0, 0], sizes = [8, 128], strides = [1, 1]} : vector<8x512xf32> to vector<8x128xf32>
      %180 = arith.negf %179 : vector<8x128xf32>
      %181 = math.exp %180 : vector<8x128xf32>
      %cst_59 = arith.constant 1.000000e+00 : f32
      %182 = vector.broadcast %cst_59 : f32 to vector<8x128xf32>
      %183 = arith.addf %182, %181 : vector<8x128xf32>
      %184 = arith.divf %182, %183 : vector<8x128xf32>
      %185 = vector.extract_strided_slice %178 {offsets = [0, 128], sizes = [8, 128], strides = [1, 1]} : vector<8x512xf32> to vector<8x128xf32>
      %186 = arith.negf %185 : vector<8x128xf32>
      %187 = math.exp %186 : vector<8x128xf32>
      %cst_60 = arith.constant 1.000000e+00 : f32
      %188 = vector.broadcast %cst_60 : f32 to vector<8x128xf32>
      %189 = arith.addf %188, %187 : vector<8x128xf32>
      %190 = arith.divf %188, %189 : vector<8x128xf32>
      %191 = vector.extract_strided_slice %178 {offsets = [0, 256], sizes = [8, 128], strides = [1, 1]} : vector<8x512xf32> to vector<8x128xf32>
      %192 = math.tanh %191 : vector<8x128xf32>
      %193 = vector.extract_strided_slice %178 {offsets = [0, 384], sizes = [8, 128], strides = [1, 1]} : vector<8x512xf32> to vector<8x128xf32>
      %194 = arith.negf %193 : vector<8x128xf32>
      %195 = math.exp %194 : vector<8x128xf32>
      %cst_61 = arith.constant 1.000000e+00 : f32
      %196 = vector.broadcast %cst_61 : f32 to vector<8x128xf32>
      %197 = arith.addf %196, %195 : vector<8x128xf32>
      %198 = arith.divf %196, %197 : vector<8x128xf32>
      %199 = arith.mulf %190, %171 : vector<8x128xf32>
      %200 = arith.mulf %184, %192 : vector<8x128xf32>
      %201 = arith.addf %199, %200 : vector<8x128xf32>
      %202 = math.tanh %201 : vector<8x128xf32>
      %203 = arith.mulf %198, %202 : vector<8x128xf32>
      %c48 = arith.constant 48 : index
      %c0_62 = arith.constant 0 : index
      %204 = vector.load %arg13[%c48, %c0_62] : memref<64x512xf32, #tpu.memory_space<vmem>>, vector<8x512xf32>
      %205 = arith.truncf %203 : vector<8x128xf32> to vector<8x128xbf16>
      %c0_63 = arith.constant 0 : index
      %c0_64 = arith.constant 0 : index
      %206 = vector.load %arg8[%c0_63, %c0_64] : memref<128x512xbf16, #tpu.memory_space<vmem>>, vector<128x512xbf16>
      %cst_65 = arith.constant dense<0.000000e+00> : vector<8x512xf32>
      %207 = tpu.matmul %205, %206, %cst_65 {dimension_numbers = #tpu.dot_dimension_numbers<[1], [0], [0], [1], [0, 0, 1, 1], [], []>} : vector<8x128xbf16>, vector<128x512xbf16>, vector<8x512xf32> -> vector<8x512xf32>
      %208 = arith.addf %204, %207 : vector<8x512xf32>
      %209 = vector.extract_strided_slice %208 {offsets = [0, 0], sizes = [8, 128], strides = [1, 1]} : vector<8x512xf32> to vector<8x128xf32>
      %210 = arith.negf %209 : vector<8x128xf32>
      %211 = math.exp %210 : vector<8x128xf32>
      %cst_66 = arith.constant 1.000000e+00 : f32
      %212 = vector.broadcast %cst_66 : f32 to vector<8x128xf32>
      %213 = arith.addf %212, %211 : vector<8x128xf32>
      %214 = arith.divf %212, %213 : vector<8x128xf32>
      %215 = vector.extract_strided_slice %208 {offsets = [0, 128], sizes = [8, 128], strides = [1, 1]} : vector<8x512xf32> to vector<8x128xf32>
      %216 = arith.negf %215 : vector<8x128xf32>
      %217 = math.exp %216 : vector<8x128xf32>
      %cst_67 = arith.constant 1.000000e+00 : f32
      %218 = vector.broadcast %cst_67 : f32 to vector<8x128xf32>
      %219 = arith.addf %218, %217 : vector<8x128xf32>
      %220 = arith.divf %218, %219 : vector<8x128xf32>
      %221 = vector.extract_strided_slice %208 {offsets = [0, 256], sizes = [8, 128], strides = [1, 1]} : vector<8x512xf32> to vector<8x128xf32>
      %222 = math.tanh %221 : vector<8x128xf32>
      %223 = vector.extract_strided_slice %208 {offsets = [0, 384], sizes = [8, 128], strides = [1, 1]} : vector<8x512xf32> to vector<8x128xf32>
      %224 = arith.negf %223 : vector<8x128xf32>
      %225 = math.exp %224 : vector<8x128xf32>
      %cst_68 = arith.constant 1.000000e+00 : f32
      %226 = vector.broadcast %cst_68 : f32 to vector<8x128xf32>
      %227 = arith.addf %226, %225 : vector<8x128xf32>
      %228 = arith.divf %226, %227 : vector<8x128xf32>
      %229 = arith.mulf %220, %201 : vector<8x128xf32>
      %230 = arith.mulf %214, %222 : vector<8x128xf32>
      %231 = arith.addf %229, %230 : vector<8x128xf32>
      %232 = math.tanh %231 : vector<8x128xf32>
      %233 = arith.mulf %228, %232 : vector<8x128xf32>
      %c56 = arith.constant 56 : index
      %c0_69 = arith.constant 0 : index
      %234 = vector.load %arg13[%c56, %c0_69] : memref<64x512xf32, #tpu.memory_space<vmem>>, vector<8x512xf32>
      %235 = arith.truncf %233 : vector<8x128xf32> to vector<8x128xbf16>
      %c0_70 = arith.constant 0 : index
      %c0_71 = arith.constant 0 : index
      %236 = vector.load %arg8[%c0_70, %c0_71] : memref<128x512xbf16, #tpu.memory_space<vmem>>, vector<128x512xbf16>
      %cst_72 = arith.constant dense<0.000000e+00> : vector<8x512xf32>
      %237 = tpu.matmul %235, %236, %cst_72 {dimension_numbers = #tpu.dot_dimension_numbers<[1], [0], [0], [1], [0, 0, 1, 1], [], []>} : vector<8x128xbf16>, vector<128x512xbf16>, vector<8x512xf32> -> vector<8x512xf32>
      %238 = arith.addf %234, %237 : vector<8x512xf32>
      %239 = vector.extract_strided_slice %238 {offsets = [0, 0], sizes = [8, 128], strides = [1, 1]} : vector<8x512xf32> to vector<8x128xf32>
      %240 = arith.negf %239 : vector<8x128xf32>
      %241 = math.exp %240 : vector<8x128xf32>
      %cst_73 = arith.constant 1.000000e+00 : f32
      %242 = vector.broadcast %cst_73 : f32 to vector<8x128xf32>
      %243 = arith.addf %242, %241 : vector<8x128xf32>
      %244 = arith.divf %242, %243 : vector<8x128xf32>
      %245 = vector.extract_strided_slice %238 {offsets = [0, 128], sizes = [8, 128], strides = [1, 1]} : vector<8x512xf32> to vector<8x128xf32>
      %246 = arith.negf %245 : vector<8x128xf32>
      %247 = math.exp %246 : vector<8x128xf32>
      %cst_74 = arith.constant 1.000000e+00 : f32
      %248 = vector.broadcast %cst_74 : f32 to vector<8x128xf32>
      %249 = arith.addf %248, %247 : vector<8x128xf32>
      %250 = arith.divf %248, %249 : vector<8x128xf32>
      %251 = vector.extract_strided_slice %238 {offsets = [0, 256], sizes = [8, 128], strides = [1, 1]} : vector<8x512xf32> to vector<8x128xf32>
      %252 = math.tanh %251 : vector<8x128xf32>
      %253 = vector.extract_strided_slice %238 {offsets = [0, 384], sizes = [8, 128], strides = [1, 1]} : vector<8x512xf32> to vector<8x128xf32>
      %254 = arith.negf %253 : vector<8x128xf32>
      %255 = math.exp %254 : vector<8x128xf32>
      %cst_75 = arith.constant 1.000000e+00 : f32
      %256 = vector.broadcast %cst_75 : f32 to vector<8x128xf32>
      %257 = arith.addf %256, %255 : vector<8x128xf32>
      %258 = arith.divf %256, %257 : vector<8x128xf32>
      %259 = arith.mulf %250, %231 : vector<8x128xf32>
      %260 = arith.mulf %244, %252 : vector<8x128xf32>
      %261 = arith.addf %259, %260 : vector<8x128xf32>
      %262 = math.tanh %261 : vector<8x128xf32>
      %263 = arith.mulf %258, %262 : vector<8x128xf32>
      %c0_76 = arith.constant 0 : index
      %c0_77 = arith.constant 0 : index
      %264 = vector.load %arg14[%c0_76, %c0_77] : memref<8x128xf32, #tpu.memory_space<vmem>>, vector<8x128xf32>
      tpu.vector_store %arg14[%c0_76, %c0_77], %263 {strides = array<i32>} : memref<8x128xf32, #tpu.memory_space<vmem>>, vector<8x128xf32>,
      %c0_78 = arith.constant 0 : index
      %c0_79 = arith.constant 0 : index
      %265 = vector.load %arg15[%c0_78, %c0_79] : memref<8x128xf32, #tpu.memory_space<vmem>>, vector<8x128xf32>
      tpu.vector_store %arg15[%c0_78, %c0_79], %261 {strides = array<i32>} : memref<8x128xf32, #tpu.memory_space<vmem>>, vector<8x128xf32>,
      %c0_80 = arith.constant 0 : index
      %c0_81 = arith.constant 0 : index
      %266 = vector.load %arg11[%c0_80, %c0_81] : memref<8x128xf32, #tpu.memory_space<vmem>>, vector<8x128xf32>
      tpu.vector_store %arg11[%c0_80, %c0_81], %263 {strides = array<i32>} : memref<8x128xf32, #tpu.memory_space<vmem>>, vector<8x128xf32>,
      %c0_82 = arith.constant 0 : index
      %c0_83 = arith.constant 0 : index
      %267 = vector.load %arg12[%c0_82, %c0_83] : memref<8x128xf32, #tpu.memory_space<vmem>>, vector<8x128xf32>
      tpu.vector_store %arg12[%c0_82, %c0_83], %261 {strides = array<i32>} : memref<8x128xf32, #tpu.memory_space<vmem>>, vector<8x128xf32>,
      %cst_84 = arith.constant 0xFF800000 : f32
      %268 = vector.broadcast %cst_84 : f32 to vector<8x1xf32>
      %c0_85 = arith.constant 0 : index
      %c0_86 = arith.constant 0 : index
      %269 = vector.load %arg17[%c0_85, %c0_86] : memref<8x1xf32, #tpu.memory_space<vmem>>, vector<8x1xf32>
      tpu.vector_store %arg17[%c0_85, %c0_86], %268 {strides = array<i32>} : memref<8x1xf32, #tpu.memory_space<vmem>>, vector<8x1xf32>,
      %cst_87 = arith.constant 0.000000e+00 : f32
      %270 = vector.broadcast %cst_87 : f32 to vector<8x1xf32>
      %c0_88 = arith.constant 0 : index
      %c0_89 = arith.constant 0 : index
      %271 = vector.load %arg18[%c0_88, %c0_89] : memref<8x1xf32, #tpu.memory_space<vmem>>, vector<8x1xf32>
      tpu.vector_store %arg18[%c0_88, %c0_89], %270 {strides = array<i32>} : memref<8x1xf32, #tpu.memory_space<vmem>>, vector<8x1xf32>,
    } else {
    }
    %c0_i32_2 = arith.constant 0 : i32
    %5 = arith.cmpi eq, %arg0, %c0_i32_2 : i32
    %6 = arith.extui %5 : i1 to i32
    %c0_i32_3 = arith.constant 0 : i32
    %7 = arith.cmpi ne, %6, %c0_i32_3 : i32
    scf.if %7 {
      %c0 = arith.constant 0 : index
      %c0_5 = arith.constant 0 : index
      %11 = vector.load %arg14[%c0, %c0_5] : memref<8x128xf32, #tpu.memory_space<vmem>>, vector<8x128xf32>
      %12 = arith.truncf %11 : vector<8x128xf32> to vector<8x128xbf16>
      %c0_6 = arith.constant 0 : index
      %c0_7 = arith.constant 0 : index
      %13 = vector.load %arg9[%c0_6, %c0_7] : memref<128x128xbf16, #tpu.memory_space<vmem>>, vector<128x128xbf16>
      %cst = arith.constant dense<0.000000e+00> : vector<8x128xf32>
      %14 = tpu.matmul %12, %13, %cst {dimension_numbers = #tpu.dot_dimension_numbers<[1], [0], [0], [1], [0, 0, 1, 1], [], []>} : vector<8x128xbf16>, vector<128x128xbf16>, vector<8x128xf32> -> vector<8x128xf32>
      %c128_i32 = arith.constant 128 : i32
      %15 = arith.muli %arg1, %c128_i32 : i32
      %16 = tpu.iota {dimensions = array<i32: 1>} : vector<8x128xi32>
      %17 = vector.broadcast %15 : i32 to vector<8x128xi32>
      %18 = arith.addi %17, %16 : vector<8x128xi32>
      %c256_i32 = arith.constant 256 : i32
      %19 = vector.broadcast %c256_i32 : i32 to vector<8x128xi32>
      %20 = arith.cmpi slt, %18, %19 : vector<8x128xi32>
      %cst_8 = arith.constant 0xFF800000 : f32
      %21 = vector.broadcast %cst_8 : f32 to vector<8x128xf32>
      %22 = arith.select %20, %14, %21 : vector<8x128xi1>, vector<8x128xf32>
      %23 = arith.index_cast %arg1 : i32 to index
      %c0_9 = arith.constant 0 : index
      %c0_10 = arith.constant 0 : index
      %24 = vector.load %arg16[%23, %c0_9, %c0_10] : memref<2x8x128xf32, #tpu.memory_space<vmem>>, vector<1x8x128xf32>
      %25 = vector.shape_cast %24 : vector<1x8x128xf32> to vector<8x128xf32>
      %26 = vector.shape_cast %22 : vector<8x128xf32> to vector<1x8x128xf32>
      tpu.vector_store %arg16[%23, %c0_9, %c0_10], %26 {strides = array<i32>} : memref<2x8x128xf32, #tpu.memory_space<vmem>>, vector<1x8x128xf32>,
      %c0_11 = arith.constant 0 : index
      %c0_12 = arith.constant 0 : index
      %27 = vector.load %arg17[%c0_11, %c0_12] : memref<8x1xf32, #tpu.memory_space<vmem>>, vector<8x1xf32>
      %cst_13 = arith.constant dense<0xFF800000> : vector<8xf32>
      %28 = vector.multi_reduction <maximumf>, %22, %cst_13 [1] : vector<8x128xf32> to vector<8xf32>
      %29 = vector.shape_cast %28 : vector<8xf32> to vector<8x1xf32>
      %30 = arith.maximumf %27, %29 : vector<8x1xf32>
      %c0_14 = arith.constant 0 : index
      %c0_15 = arith.constant 0 : index
      %31 = vector.load %arg18[%c0_14, %c0_15] : memref<8x1xf32, #tpu.memory_space<vmem>>, vector<8x1xf32>
      %32 = arith.subf %27, %30 : vector<8x1xf32>
      %33 = math.exp %32 : vector<8x1xf32>
      %34 = arith.mulf %31, %33 : vector<8x1xf32>
      %35 = vector.broadcast %30 : vector<8x1xf32> to vector<8x128xf32>
      %36 = arith.subf %22, %35 : vector<8x128xf32>
      %37 = math.exp %36 : vector<8x128xf32>
      %cst_16 = arith.constant dense<0.000000e+00> : vector<8xf32>
      %38 = vector.multi_reduction <add>, %37, %cst_16 [1] : vector<8x128xf32> to vector<8xf32>
      %39 = vector.shape_cast %38 : vector<8xf32> to vector<8x1xf32>
      %40 = arith.addf %34, %39 : vector<8x1xf32>
      %c0_17 = arith.constant 0 : index
      %c0_18 = arith.constant 0 : index
      %41 = vector.load %arg18[%c0_17, %c0_18] : memref<8x1xf32, #tpu.memory_space<vmem>>, vector<8x1xf32>
      tpu.vector_store %arg18[%c0_17, %c0_18], %40 {strides = array<i32>} : memref<8x1xf32, #tpu.memory_space<vmem>>, vector<8x1xf32>,
      %c0_19 = arith.constant 0 : index
      %c0_20 = arith.constant 0 : index
      %42 = vector.load %arg17[%c0_19, %c0_20] : memref<8x1xf32, #tpu.memory_space<vmem>>, vector<8x1xf32>
      tpu.vector_store %arg17[%c0_19, %c0_20], %30 {strides = array<i32>} : memref<8x1xf32, #tpu.memory_space<vmem>>, vector<8x1xf32>,
    } else {
    }
    %c1_i32 = arith.constant 1 : i32
    %8 = arith.cmpi eq, %arg0, %c1_i32 : i32
    %9 = arith.extui %8 : i1 to i32
    %c0_i32_4 = arith.constant 0 : i32
    %10 = arith.cmpi ne, %9, %c0_i32_4 : i32
    scf.if %10 {
      %c0 = arith.constant 0 : index
      %c0_5 = arith.constant 0 : index
      %11 = vector.load %arg17[%c0, %c0_5] : memref<8x1xf32, #tpu.memory_space<vmem>>, vector<8x1xf32>
      %c0_6 = arith.constant 0 : index
      %c0_7 = arith.constant 0 : index
      %12 = vector.load %arg18[%c0_6, %c0_7] : memref<8x1xf32, #tpu.memory_space<vmem>>, vector<8x1xf32>
      %13 = math.log %12 : vector<8x1xf32>
      %14 = arith.addf %11, %13 : vector<8x1xf32>
      %15 = arith.index_cast %arg1 : i32 to index
      %c0_8 = arith.constant 0 : index
      %c0_9 = arith.constant 0 : index
      %16 = vector.load %arg16[%15, %c0_8, %c0_9] : memref<2x8x128xf32, #tpu.memory_space<vmem>>, vector<1x8x128xf32>
      %17 = vector.shape_cast %16 : vector<1x8x128xf32> to vector<8x128xf32>
      %18 = vector.broadcast %14 : vector<8x1xf32> to vector<8x128xf32>
      %19 = arith.subf %17, %18 : vector<8x128xf32>
      %c0_10 = arith.constant 0 : index
      %c0_11 = arith.constant 0 : index
      %20 = vector.load %arg10[%c0_10, %c0_11] : memref<8x128xf32, #tpu.memory_space<vmem>>, vector<8x128xf32>
      tpu.vector_store %arg10[%c0_10, %c0_11], %19 {strides = array<i32>} : memref<8x128xf32, #tpu.memory_space<vmem>>, vector<8x128xf32>,
    } else {
    }
    return
  }
  func.func @transform_0(%arg0: i32, %arg1: i32) -> (i32, i32) {
    %c0_i32 = arith.constant 0 : i32
    %c0_i32_0 = arith.constant 0 : i32
    %c0_i32_1 = arith.constant 0 : i32
    return %c0_i32, %c0_i32_0 : i32, i32
  }
  func.func @transform_1(%arg0: i32, %arg1: i32) -> (i32, i32) {
    %c0_i32 = arith.constant 0 : i32
    %c0_i32_0 = arith.constant 0 : i32
    %c0_i32_1 = arith.constant 0 : i32
    return %c0_i32, %c0_i32_0 : i32, i32
  }
  func.func @transform_2(%arg0: i32, %arg1: i32) -> (i32, i32) {
    %c0_i32 = arith.constant 0 : i32
    %c0_i32_0 = arith.constant 0 : i32
    %c0_i32_1 = arith.constant 0 : i32
    return %c0_i32, %c0_i32_0 : i32, i32
  }
  func.func @transform_3(%arg0: i32, %arg1: i32) -> (i32, i32) {
    %c0_i32 = arith.constant 0 : i32
    %c0_i32_0 = arith.constant 0 : i32
    %c0_i32_1 = arith.constant 0 : i32
    return %c0_i32, %c0_i32_0 : i32, i32
  }
  func.func @transform_4(%arg0: i32, %arg1: i32) -> (i32, i32) {
    %c0_i32 = arith.constant 0 : i32
    %c0_i32_0 = arith.constant 0 : i32
    %c0_i32_1 = arith.constant 0 : i32
    return %c0_i32, %c0_i32_0 : i32, i32
  }
  func.func @transform_5(%arg0: i32, %arg1: i32) -> (i32, i32) {
    %c0_i32 = arith.constant 0 : i32
    %c0_i32_0 = arith.constant 0 : i32
    %c0_i32_1 = arith.constant 0 : i32
    return %c0_i32, %c0_i32_0 : i32, i32
  }
  func.func @transform_6(%arg0: i32, %arg1: i32) -> (i32, i32) {
    %c0_i32 = arith.constant 0 : i32
    %c0_i32_0 = arith.constant 0 : i32
    %c0_i32_1 = arith.constant 0 : i32
    return %c0_i32, %c0_i32_0 : i32, i32
  }
  func.func @transform_7(%arg0: i32, %arg1: i32) -> (i32, i32) {
    %c1_i32 = arith.constant 1 : i32
    %0 = arith.subi %c1_i32, %arg0 : i32
    %1 = arith.muli %arg1, %0 : i32
    %c0_i32 = arith.constant 0 : i32
    %c0_i32_0 = arith.constant 0 : i32
    return %c0_i32, %1 : i32, i32
  }
  func.func @transform_8(%arg0: i32, %arg1: i32) -> (i32, i32) {
    %0 = arith.muli %arg1, %arg0 : i32
    %c0_i32 = arith.constant 0 : i32
    %c0_i32_0 = arith.constant 0 : i32
    return %c0_i32, %0 : i32, i32
  }
  func.func @transform_9(%arg0: i32, %arg1: i32) -> (i32, i32) {
    %c0_i32 = arith.constant 0 : i32
    %c0_i32_0 = arith.constant 0 : i32
    %c0_i32_1 = arith.constant 0 : i32
    return %c0_i32, %c0_i32_0 : i32, i32
  }
  func.func @transform_10(%arg0: i32, %arg1: i32) -> (i32, i32) {
    %c0_i32 = arith.constant 0 : i32
    %c0_i32_0 = arith.constant 0 : i32
    %c0_i32_1 = arith.constant 0 : i32
    return %c0_i32, %c0_i32_0 : i32, i32
  }
}

</mosaic_0001>

<bundles_post_ra>
// kernel: tpu_custom_call.1
= control target key start
LH: loop header
LB: loop body
LE: loop exit
PB: predicated region body
PF: predicated region fallthrough
CT: control target
= control target key end

     0   :  { %s4274_s0 = inlined_call_operand.hbm [shape: bf16[64,64], index: 0, kind: input, shape index: {}]   ;;  %s4275_s1 = inlined_call_operand.hbm [shape: bf16[8,64], index: 1, kind: input, shape index: {}]   ;;  %s4276_s2 = inlined_call_operand.hbm [shape: bf16[64,128], index: 2, kind: input, shape index: {}]   ;;  %s4277_s3 = inlined_call_operand.vmem [shape: f32[1,128], index: 3, kind: input, shape index: {}]   ;;  %s4278_s4 = inlined_call_operand.hbm [shape: bf16[64,512], index: 4, kind: input, shape index: {}]   ;;  %s4279_s5 = inlined_call_operand.vmem [shape: f32[1,512], index: 5, kind: input, shape index: {}]   ;;  %s4280_s6 = inlined_call_operand.hbm [shape: bf16[128,512], index: 6, kind: input, shape index: {}]   ;;  %s4281_s7 = inlined_call_operand.hbm [shape: bf16[128,256], index: 7, kind: input, shape index: {}]   ;;  %s4282_s8 = inlined_call_operand.hbm [shape: f32[8,256], index: 8, kind: output, shape index: {0}]   ;;  %s4283_s9 = inlined_call_operand.hbm [shape: f32[8,128], index: 9, kind: output, shape index: {1}]   ;;  %s4284_s10 = inlined_call_operand.hbm [shape: f32[8,128], index: 10, kind: output, shape index: {2}]  }
   0x1   :  { %4309 = sst [smem:[#allocation58_spill]] %s4274_s0 }
   0x2   :  { %4310 = sst [smem:[#allocation59_spill]] %s4275_s1 }
   0x3   :  { %4311 = sst [smem:[#allocation60_spill]] %s4276_s2 }
   0x4   :  { %4312 = sst [smem:[#allocation61_spill]] %s4277_s3 }
   0x5   :  { %4313 = sst [smem:[#allocation62_spill]] %s4278_s4 }
   0x6   :  { %4314 = sst [smem:[#allocation63_spill]] %s4279_s5 }
   0x7   :  { %4315 = sst [smem:[#allocation64_spill]] %s4280_s6 }
   0x8   :  { %4316 = sst [smem:[#allocation65_spill]] %s4282_s8 }
   0x9   :  { %4317 = sst [smem:[#allocation66_spill]] %s4283_s9 }
   0xa   :  { %4318 = sst [smem:[#allocation67_spill]] %s4284_s10 }
   0xb   :  { %16 = vsyncpa [#allocation9], 0 }
   0xc   :  { %17 = vsyncpa [#allocation12], 0 }
   0xd   :  { %18 = vsyncpa [#allocation15], 0 }
   0xe   :  { %19 = vsyncpa [#allocation18], 0 }
   0xf   :  { %21 = vsyncpa [#allocation18 + $0x1], 0 }
  0x10   :  { %22 = vsyncpa [#allocation10], 0 }
  0x11   :  { %24 = vsyncpa [#allocation10 + $0x1], 0 }
  0x12   :  { %25 = vsyncpa [#allocation21], 0  ;;  %s3400_s13 = smov 0   ;;  %s3402_s14 = smov 0  }
  0x13   :  { %s3404_s15 = smov 0   ;;  %s3406_s16 = smov 0  }
  0x14   :  { %s3408_s17 = smov 0   ;;  %s3410_s18 = smov 0  }
  0x15   :  { %s3412_s19 = smov 0   ;;  %s3414_s20 = smov 0  }
  0x16   :  { %s3416_s21 = smov 0   ;;  %s3418_s22 = smov 0  }
  0x17   :  { %s3420_s23 = smov 0  }
  0x18 LB: > { %4319 = sst [smem:[#allocation29_spill]] %s3281_s13  ;;  %s2367_s24 = sadd.s32 4294967295, %s3321_s23   ;;  %s3321_s23 = sphi %s3420_s23, %s31_s23   ;;  %s3317_s22 = sphi %s3418_s22, %s4421_s22   ;;  %s3313_s21 = sphi %s3416_s21, %s4420_s21   ;;  %s3309_s20 = sphi %s3414_s20, %s4413_s20   ;;  %s3305_s19 = sphi %s3412_s19, %s4412_s19   ;;  %s3301_s18 = sphi %s3410_s18, %s4419_s18   ;;  %s3297_s17 = sphi %s3408_s17, %s4418_s17   ;;  %s3293_s16 = sphi %s3406_s16, %s4417_s16   ;;  %s3289_s15 = sphi %s3404_s15, %s4416_s15   ;;  %s3285_s14 = sphi %s3402_s14, %s4415_s14   ;;  %s3281_s13 = sphi %s3400_s13, %s4414_s13  }
  0x19   : > { %4320 = sst [smem:[#allocation30_spill]] %s3305_s19  ;;  %s2368_s25 = sadd.s32 4294967294, %s3321_s23  }
  0x1a   : > { %4321 = sst [smem:[#allocation31_spill]] %s3309_s20  ;;  %p214_p0 = scmp.ne.s32.totalorder %s3297_s17, %s3293_s16 }
  0x1b   : > { %4322 = sst [smem:[#allocation32_spill]] %s3313_s21  ;;  %p3456_p1 = scmp.eq.s32.totalorder %s2367_s24, 0 }
  0x1c   : > { %4323 = sst [smem:[#allocation33_spill]] %s3317_s22  ;;  %p239_p2 = scmp.ne.s32.totalorder %s3289_s15, %s3285_s14 }
  0x1d   : > { %s4324_s26 = scalar_select %p3456_p1, 1, 0 }
  0x1e   : > { %p3462_p3 = scmp.eq.s32.totalorder %s2367_s24, 3  ;;  %p3468_p4 = por %p3456_p1, %p214_p0 }
  0x1f   : > { %p245_p5 = scmp.ne.s32.totalorder %s3285_s14, %s3281_s13  ;;  %p246_p7 = scmp.eq.s32.totalorder %s2368_s25, 3 }
  0x20   : > { %s4325_s27 = scalar_select %p3462_p3, 1, 0 }
  0x21   : > { %s4327_s28 = scalar_select %p3468_p4, 1, 0 }
  0x22   : > { %4326 = sst [smem:[#allocation34_spill]] %s4325_s27  ;;  %p3476_p6 = por %p3462_p3, %p239_p2 }
  0x23   : > { %p2369_p8 = scmp.ge.s32.totalorder %s3321_s23, 1  ;;  %p295_p9 = scmp.lt.s32.totalorder %s3321_s23, 5 }
  0x24   : > { %s4328_s29 = scalar_select %p3476_p6, 1, 0 }
  0x25   : > { %p3482_p10 = por %p246_p7, %p245_p5  ;;  %p3486_p11 = pnand %p2369_p8, %p295_p9 }
  0x26   : > { %4329 = sst [smem:[#allocation35_spill]] %s4328_s29  ;;  %s3323_s12 = smov [#allocation11]  }
  0x27   : > { %s4330_s30 = scalar_select %p3482_p10, 1, 0 }
  0x28   : > { %s4332_s11 = scalar_select %p3486_p11, 1, 0 }
  0x29   : > { %4331 = sst [smem:[#allocation36_spill]] %s4330_s30  ;;  %s321_s16 = sshll.u32 %s3323_s12, 4  ;;  %s322_s16 = int_to_ptr.vmem [resolvable:$true] %s321_s16 }
  0x2a   : > { %p2575_p12 = pneg %p3486_p11  ;;  %s3324_s25 = smov [#allocation14]  }
  0x2b   : > { %s347_s13 = sshll.u32 %s3324_s25, 4  ;;  %s2990_s10 = scalar_lea.vmem %s322_s16, 64  ;;  %s348_s13 = int_to_ptr.vmem [resolvable:$true] %s347_s13 }
  0x2c   : > { %p3494_p13 = pnand %p2575_p12, %p3456_p1  ;;  %p2991_p2 = scmp.ne.s32.totalorder %s322_s16, %s2990_s10 }
  0x2d   : > { %p2998_p8 = scmp.lt.s32.totalorder %s322_s16, %s322_s16  ;;  %p2999_p9 = scmp.lt.s32.totalorder %s2990_s10, %s2990_s10 }
  0x2e   : > { %p3500_p0 = pneg %p3494_p13 }
  0x2f   : > { %p3000_p12 = por %p2999_p9, %p2998_p8 }
  0x30   : > { %p2993_p5 = pnand %p2991_p2, %p3500_p0 }
  0x32   : > { %p2994_p7 = pneg %p2993_p5 }
  0x34   : > { %p3001_p10 = pnand %p3000_p12, %p2994_p7 }
  0x36   : > { %3004 = shalt.err (!%p3001_p10)
}
  0x37   : > { %s4335_s1 = sld [smem:[#allocation59_spill]]  ;;  %s3016_s8 = scalar_lea.vmem %s348_s13, 2048 }
  0x38   : > { %p3017_p6 = scmp.ne.s32.totalorder %s348_s13, %s3016_s8  ;;  %p3024_p1 = scmp.lt.s32.totalorder %s348_s13, %s348_s13 }
  0x39   : > { %p3025_p2 = scmp.lt.s32.totalorder %s3016_s8, %s3016_s8 }
  0x3a   : > { %p3019_p3 = pnand %p3017_p6, %p3500_p0 }
  0x3b   : > { %p3026_p5 = por %p3025_p2, %p3024_p1 }
  0x3c   : > { %p3020_p4 = pneg %p3019_p3 }
  0x3d   : > { %2581 = dma.hbm_to_vmem [thread:$0]  (!%p3494_p13), %s4335_s1, 64, %s322_s16, [#allocation12]  }
  0x3e   : > { %p3027_p11 = pnand %p3026_p5, %p3020_p4 }
  0x40   : > { %3030 = shalt.err (!%p3027_p11)
}
  0x41   : > { %s4299_s10 = smov 256   ;;  %s4300_s29 = smov 16  }
  0x42   : > { %s4336_s4 = sld [smem:[#allocation62_spill]]  ;;  %s3327_s25 = smov [#allocation8]  }
  0x43   : > { %s307_s1 = sshll.u32 %s3327_s25, 4  ;;  %s308_s1 = int_to_ptr.vmem [resolvable:$true] %s307_s1 }
  0x44   : > { %s3042_s9 = scalar_lea.vmem %s308_s1, 512  ;;  %p3050_p6 = scmp.lt.s32.totalorder %s308_s1, %s308_s1 }
  0x45   : > { %p3043_p3 = scmp.ne.s32.totalorder %s308_s1, %s3042_s9  ;;  %p3051_p10 = scmp.lt.s32.totalorder %s3042_s9, %s3042_s9 }
  0x47   : > { %p3045_p1 = pnand %p3043_p3, %p3500_p0  ;;  %p3052_p11 = por %p3051_p10, %p3050_p6 }
  0x48   : > { %2587 = dma.hbm_to_vmem [thread:$0]  (!%p3494_p13), %s4336_s4, 2048, %s348_s13, [#allocation15], %s4299_s10, %s4299_s10, %s4300_s29  }
  0x49   : > { %p3046_p4 = pneg %p3045_p1 }
  0x4b   : > { %p3053_p7 = pnand %p3052_p11, %p3046_p4 }
  0x4d   : > { %3056 = shalt.err (!%p3053_p7)
}
  0x4e   : > { %s4301_s8 = smov 64   ;;  %s4302_s27 = smov 4  }
  0x4f   : > { %s4337_s0 = sld [smem:[#allocation58_spill]]  ;;  %s3330_s16 = smov [#allocation13]  }
  0x50   : > { %s331_s25 = sshll.u32 %s3330_s16, 4  ;;  %s3331_s10 = smov [#allocation16]   ;;  %s332_s25 = int_to_ptr.vmem [resolvable:$true] %s331_s25 }
  0x51   : > { %s363_s29 = sshll.u32 %s3331_s10, 4  ;;  %s3068_s9 = scalar_lea.vmem %s332_s25, 512  ;;  %s364_s29 = int_to_ptr.vmem [resolvable:$true] %s363_s29 }
  0x52   : > { %p3069_p8 = scmp.ne.s32.totalorder %s332_s25, %s3068_s9  ;;  %p3076_p2 = scmp.lt.s32.totalorder %s332_s25, %s332_s25 }
  0x53   : > { %p3077_p5 = scmp.lt.s32.totalorder %s3068_s9, %s3068_s9 }
  0x54   : > { %p3071_p9 = pnand %p3069_p8, %p3500_p0 }
  0x55   : > { %2578 = dma.hbm_to_vmem [thread:$0]  (!%p3494_p13), %s4337_s0, 512, %s308_s1, [#allocation9], %s4301_s8, %s4301_s8, %s4302_s27  }
  0x56   : > { %p3072_p12 = pneg %p3071_p9  ;;  %p3078_p3 = por %p3077_p5, %p3076_p2 }
  0x58   : > { %p3079_p1 = pnand %p3078_p3, %p3072_p12 }
  0x5a   : > { %3082 = shalt.err (!%p3079_p1)
}
  0x5b   : > { %s4338_s2 = sld [smem:[#allocation60_spill]]  ;;  %s3094_s10 = scalar_lea.vmem %s364_s29, 4096 }
  0x5c   : > { %p3095_p4 = scmp.ne.s32.totalorder %s364_s29, %s3094_s10  ;;  %p3102_p11 = scmp.lt.s32.totalorder %s364_s29, %s364_s29 }
  0x5d   : > { %p3103_p7 = scmp.lt.s32.totalorder %s3094_s10, %s3094_s10 }
  0x5e   : > { %p3097_p6 = pnand %p3095_p4, %p3500_p0 }
  0x5f   : > { %p3104_p8 = por %p3103_p7, %p3102_p11 }
  0x60   : > { %p3098_p10 = pneg %p3097_p6 }
  0x61   : > { %2584 = dma.hbm_to_vmem [thread:$0]  (!%p3494_p13), %s4338_s2, 512, %s332_s25, [#allocation12], %s4301_s8, %s4301_s8, %s4302_s27  }
  0x62   : > { %p3105_p9 = pnand %p3104_p8, %p3098_p10 }
  0x64   : > { %3108 = shalt.err (!%p3105_p9)
}
  0x65   : > { %s4339_s12 = smov 16   ;;  %s4340_s16 = smov 256  }
  0x66   : > { %s4341_s6 = sld [smem:[#allocation64_spill]]  ;;  %s40_s30 = sadd.s32 1, %s3313_s21 }
  0x67   : > { %s43_s24 = sadd.s32 1, %s3317_s22  ;;  %p41_p0 = scmp.ge.s32.totalorder %s40_s30, 2 }
  0x68   : > { %s194_s25 = ssub.s32 1, %s3317_s22  ;;  %s201_s1 = sadd.s32 1, %s3301_s18 }
  0x69   : > { %s195_s0 = smul.u32 %s3313_s21, %s194_s25  ;;  %s4423_s30 = smov (%p41_p0, %s40_s30), 0 }
  0x6a   : > { %s4425_s24 = smov (!%p41_p0, %s43_s24), %s3317_s22  ;;  %p208_p12 = scmp.ne.s32.totalorder %s3301_s18, %s3297_s17 }
  0x6b   : > { %p209_p2 = scmp.eq.s32.totalorder %s3321_s23, 0  ;;  %p45_p5 = scmp.ge.s32.totalorder %s4425_s24, 2 }
  0x6c   : > { %2590 = dma.hbm_to_vmem [thread:$0]  (!%p3494_p13), %s4341_s6, 4096, %s364_s29, [#allocation15], %s4340_s16, %s4340_s16, %s4339_s12  }
  0x6d   : > { %s224_s13 = smul.u32 %s3313_s21, %s3317_s22  ;;  %p3564_p13 = por %p209_p2, %p208_p12 }
  0x6e   : > { %s229_s10 = sadd.s32 1, %s3289_s15  ;;  %s4427_s24 = smov (%p45_p5, %s4425_s24), 0 }
  0x6f   : > { %p2604_p3 = scmp.lt.s32.totalorder %s3321_s23, 4  ;;  %s377_s12 = sand.u32 1, %s3301_s18  }
  0x70   : > { %s196_s16 = ssub.s32 1, %s4427_s24  ;;  %s225_s9 = smul.u32 %s4427_s24, %s4423_s30 }
  0x71   : > { %s197_s25 = smul.u32 %s196_s16, %s4423_s30  ;;  %s2376_s27 = sshll.u32 %s377_s12, 6 }
  0x72   : > { %s226_s8 = ssub.s32 %s224_s13, %s225_s9  ;;  %s2377_s22 = sshll.u32 %s195_s0, 6 }
  0x73   : > { %s198_s2 = ssub.s32 %s195_s0, %s197_s25  ;;  %p227_p1 = scmp.eq.s32.totalorder %s226_s8, 0 }
  0x74   : > { %p199_p4 = scmp.eq.s32.totalorder %s198_s2, 0  ;;  %s381_s21 = scalar_lea.vmem [#allocation17], %s2376_s27 }
  0x75   : > { %s3578_s4 = scalar_select %p227_p1, %s3289_s15, %s229_s10  }
  0x76   : > { %s3581_s6 = scalar_select %p199_p4, %s3301_s18, %s201_s1  }
  0x77   : > { %s389_s5 = sshll.u32 %s381_s21, 4  ;;  %s388_s20 = scalar_lea.hbm %s4281_s7, %s2377_s22  ;;  %s390_s5 = int_to_ptr.vmem [resolvable:$true] %s389_s5 }
  0x78   : > { %p3590_p6 = pnand %p2604_p3, %p3564_p13  ;;  %s378_s2 = scalar_lea.sflag [#allocation18], %s377_s12 }
  0x79   : > { %s3122_s8 = scalar_lea.vmem %s390_s5, 1024  ;;  %s3332_s21 = smov [#allocation17]  }
  0x7a   : > { %p3111_p10 = pneg %p3590_p6  ;;  %p3123_p11 = scmp.ne.s32.totalorder %s390_s5, %s3122_s8 }
  0x7b   : > { %s3127_s27 = sshll.u32 %s3332_s21, 4  ;;  %s3128_s27 = int_to_ptr.vmem [resolvable:$false] %s3127_s27 }
  0x7c   : > { %p3125_p7 = pnand %p3123_p11, %p3111_p10  ;;  %s3129_s3 = scalar_lea.vmem %s3128_s27, 2048 }
  0x7d   : > { %p3130_p9 = scmp.lt.s32.totalorder %s390_s5, %s3128_s27  ;;  %p3131_p0 = scmp.lt.s32.totalorder %s3129_s3, %s3122_s8 }
  0x7e   : > { %p3126_p8 = pneg %p3125_p7 }
  0x7f   : > { %p3132_p12 = por %p3131_p0, %p3130_p9 }
  0x81   : > { %p3133_p2 = pnand %p3132_p12, %p3126_p8 }
  0x83   : > { %3136 = shalt.err (!%p3133_p2)
}
  0x84   : > { %s3333_s19 = smov 128   ;;  %s4344_s22 = smov 4  }
  0x85   : > { %s4345_s0 = smov 64   ;;  %p4346_p5 = scmp.ne.s32.totalorder %s4332_s11, 0 }
  0x86   : > { %2594 = dma.hbm_to_vmem [thread:$0]  (!%p3590_p6), %s388_s20, 1024, %s390_s5, %s378_s2, %s3333_s19, %s4345_s0, %s4344_s22  }
  0x87   : > { %401 = sbr.rel (%p4346_p5) target bundleno = 3273 (0xcc9), region = 52  ;;  %p4347_p13 = scmp.ne.s32.totalorder (!%p4346_p5), %s4324_s26, 0 }
  0x8c   : > { %3256 = dma.done.wait (%p4347_p13), [#allocation9], 512  }
  0x8d   : > { %3258 = vsyncadd (%p4347_p13), [#allocation9], 4294966784 }
  0x8e   : > { %3260 = dma.done.wait (%p4347_p13), [#allocation12], 576  }
  0x8f   : > { %3262 = vsyncadd (%p4347_p13), [#allocation12], 4294966720 }
  0x90   : > { %3264 = dma.done.wait (%p4347_p13), [#allocation15], 6144  }
  0x91   : > { %3266 = vsyncadd (%p4347_p13), [#allocation15], 4294961152  ;;  %s423_s5 = sand.u32 1, %s3297_s17   ;;  %p4348_p3 = scmp.ne.s32.totalorder %s4327_s28, 0 }
  0x92   : > { %s2384_s20 = sshll.u32 %s423_s5, 6  ;;  %s424_s11 = scalar_lea.sflag [#allocation18], %s423_s5 }
  0x93   : > { %s3615_s1 = scalar_lea.vmem [#allocation17], %s2384_s20 }
  0x94   : > { %3268 = dma.done.wait (%p4348_p3), %s424_s11, 1024  }
  0x95   : > { %3270 = vsyncadd (%p4348_p3), %s424_s11, 4294966272  ;;  %s4349_s29 = sld [smem:[#allocation31_spill]]  ;;  %s457_s12 = sand.u32 1, %s3285_s14  }
  0x96   : > { %s4350_s10 = sld [smem:[#allocation30_spill]]  ;;  %s3625_s26 = sshll.u32 %s457_s12, 3 }
  0x97   : > { %s459_s16 = scalar_lea.vmem [#allocation19], %s3625_s26 }
  0x9b   : > { %p468_p1 = scmp.eq.s32.totalorder %s4349_s29, 0 }
  0x9c   : > { %p469_p4 = scmp.eq.s32.totalorder %s4350_s10, 0 }
  0x9e   : > { %p470_p6 = pnand %p469_p4, %p468_p1 }
  0xa0   : > { %473 = sbr.rel (%p470_p6) target bundleno = 2386 (0x952), region = 80 }
  0xa5   : > { %vm2010_vm0 = vcmask 7168   ;;  %v2723_v0 = vld [vmem:[#allocation13 + $0x18] sm:$0xff]   ;;  %v3334_v1 = vmov 0.0   ;;  %v3335_v2 = vmov -inf   ;;  %v2724_v3 = vld [vmem:[#allocation13 + $0x10] sm:$0xff]   ;;  %vm3336_vm1 = vmmov 0  }
  0xa6   : > { %2511 = vmatprep.subr.bf16.mxu0 %v3334_v1  ;;  %2011 = vst.msk [vmem:[#allocation6] sm:$0xff] %vm2010_vm0, %v3335_v2  ;;  %2012 = vst.msk [vmem:[#allocation7] sm:$0xff] %vm2010_vm0, %v3334_v1  ;;  %2519 = vmatprep.mubr.msk.bf16.mxu0 %vm3336_vm1, %v3334_v1  ;;  %v2725_v4 = vld [vmem:[#allocation13 + $0x8] sm:$0xff]   ;;  %v2727_v5 = vld [vmem:[#allocation14 + $0x64] ss:$16 sps:$4 sm:$0xff]   ;;  %v4306_v7 = vmov 0   ;;  %v584_v60 = vlaneseq }
  0xa7   : > { %2512 = vmatpush3.bf16.msra.mxu0 %v2723_v0  ;;  %v2729_v6 = vld [vmem:[#allocation14 + $0x60] ss:$16 sps:$4 sm:$0xff]   ;;  %748 = vmatprep.mubr.bf16.mxu1 %v4306_v7  ;;  %v2730_v8 = vld [vmem:[#allocation14 + $0x44] ss:$16 sps:$4 sm:$0xff]   ;;  %v2735_v12 = vld [vmem:[#allocation14 + $0x6c] ss:$16 sps:$4 sm:$0xff]  }
  0xa8   : > { %2513 = vmatprep.subr.bf16.mxu0 %v3334_v1  ;;  %724 = vmatprep.subr.bf16.mxu1 %v2727_v5  ;;  %v2732_v9 = vld [vmem:[#allocation14 + $0x40] ss:$16 sps:$4 sm:$0xff]   ;;  %v2736_v10 = vld [vmem:[#allocation14 + $0x24] ss:$16 sps:$4 sm:$0xff]   ;;  %v474_v14 = vld [vmem:[#allocation11] sm:$0xf] }
  0xa9   : > { %725 = vmatpush1.bf16.msra.mxu1 %v2729_v6  ;;  %v2726_v11 = vld [vmem:[#allocation13] sm:$0xff]   ;;  %vm514_vm2 = vcmask 523264   ;;  %v2733_v16 = vld [vmem:[#allocation14 + $0x68] ss:$16 sps:$4 sm:$0xff]   ;;  %v2741_v17 = vld [vmem:[#allocation14 + $0x4c] ss:$16 sps:$4 sm:$0xff]  }
  0xaa   : > { %726 = vmatprep.subr.bf16.mxu1 %v2730_v8  ;;  %v2738_v13 = vld [vmem:[#allocation14 + $0x20] ss:$16 sps:$4 sm:$0xff]   ;;  %v2742_v15 = vld [vmem:[#allocation14 + $0x4] ss:$16 sps:$4 sm:$0xff]   ;;  %v2739_v20 = vld [vmem:[#allocation14 + $0x48] ss:$16 sps:$4 sm:$0xff]  }
  0xab   : > { %2514 = vmatpush3.bf16.msra.mxu0 %v2724_v3  ;;  %v2744_v18 = vld [vmem:[#allocation14] ss:$16 sps:$4 sm:$0xff]   ;;  %v3631_v19 = vld [vmem:[#allocation16 + $0xe4] ss:$16 sps:$4 sm:$0xff]   ;;  %v2747_v21 = vld [vmem:[#allocation14 + $0x2c] ss:$16 sps:$4 sm:$0xff]  }
  0xac   : > { %2515 = vmatprep.subr.bf16.mxu0 %v3334_v1  ;;  %v2748_v22 = vld [vmem:[#allocation8] sm:$0xff]   ;;  %v3637_v24 = vld [vmem:[#allocation16 + $0xc4] ss:$16 sps:$4 sm:$0xff]   ;;  %v2745_v25 = vld [vmem:[#allocation14 + $0x28] ss:$16 sps:$4 sm:$0xff]   ;;  %s4351_s25 = sld [smem:[#allocation61_spill]] }
  0xad   : > { %727 = vmatpush1.bf16.msra.mxu1 %v2732_v9  ;;  %v3634_v23 = vld [vmem:[#allocation16 + $0xe0] ss:$16 sps:$4 sm:$0xff]   ;;  %v2751_v26 = vld [vmem:[#allocation14 + $0xc] ss:$16 sps:$4 sm:$0xff]   ;;  %v3645_v28 = vld [vmem:[#allocation16 + $0xa4] ss:$16 sps:$4 sm:$0xff]  }
  0xae   : > { %728 = vmatprep.subr.bf16.mxu1 %v2736_v10  ;;  %v3642_v27 = vld [vmem:[#allocation16 + $0xc0] ss:$16 sps:$4 sm:$0xff]   ;;  %v2749_v29 = vld [vmem:[#allocation14 + $0x8] ss:$16 sps:$4 sm:$0xff]   ;;  %v3647_v30 = vld [vmem:[#allocation16 + $0xec] ss:$16 sps:$4 sm:$0xff]  }
  0xaf   : > { %2516 = vmatpush3.bf16.msra.mxu0 %v2725_v4  ;;  %v2758_v31 = vld [vmem:[#allocation8 + $0x8] sm:$0xff]   ;;  %v3650_v32 = vld [vmem:[#allocation16 + $0xa0] ss:$16 sps:$4 sm:$0xff]   ;;  %v3659_v35 = vld [vmem:[#allocation16 + $0xcc] ss:$16 sps:$4 sm:$0xff]   ;;  %v585_v62 = vshrl.u32 %v584_v60, 7 }
  0xb0   : > { %2517 = vmatprep.subr.bf16.mxu0 %v3334_v1  ;;  %v3653_v33 = vld [vmem:[#allocation16 + $0x84] ss:$16 sps:$4 sm:$0xff]   ;;  %v3655_v34 = vld [vmem:[#allocation16 + $0xe8] ss:$16 sps:$4 sm:$0xff]   ;;  %v3663_v36 = vld [vmem:[#allocation16 + $0x80] ss:$16 sps:$4 sm:$0xff]  }
  0xb1   : > { %729 = vmatpush1.bf16.msra.mxu1 %v2738_v13  ;;  %v3666_v37 = vld [vmem:[#allocation16 + $0xc8] ss:$16 sps:$4 sm:$0xff]   ;;  %v3669_v38 = vld [vmem:[#allocation16 + $0x64] ss:$16 sps:$4 sm:$0xff]   ;;  %v3673_v39 = vld [vmem:[#allocation16 + $0xac] ss:$16 sps:$4 sm:$0xff]  }
  0xb2   : > { %730 = vmatprep.subr.bf16.mxu1 %v2742_v15  ;;  %v2771_v40 = vld [vmem:[#allocation8 + $0x10] sm:$0xff]   ;;  %v3680_v42 = vld [vmem:[#allocation16 + $0x44] ss:$16 sps:$4 sm:$0xff]   ;;  %v3683_v43 = vld [vmem:[#allocation16 + $0xa8] ss:$16 sps:$4 sm:$0xff]   ;;  %v586_v3 = vsub.s32 0, %v585_v62 }
  0xb3   : > { %2518 = vmatpush3.bf16.msra.mxu0 %v2726_v11  ;;  %v3677_v41 = vld [vmem:[#allocation16 + $0x60] ss:$16 sps:$4 sm:$0xff]   ;;  %v3687_v44 = vld [vmem:[#allocation16 + $0x8c] ss:$16 sps:$4 sm:$0xff]   ;;  %v3695_v46 = vld [vmem:[#allocation16 + $0x24] ss:$16 sps:$4 sm:$0xff]  }
  0xb4   : > { %797 = vmatprep.subr.bf16.mxu0 %v2735_v12  ;;  %v3691_v45 = vld [vmem:[#allocation16 + $0x40] ss:$16 sps:$4 sm:$0xff]   ;;  %v3698_v47 = vld [vmem:[#allocation16 + $0x88] ss:$16 sps:$4 sm:$0xff]   ;;  %v3702_v48 = vld [vmem:[#allocation16 + $0x6c] ss:$16 sps:$4 sm:$0xff]  }
  0xb5   : > { %731 = vmatpush1.bf16.msra.mxu1 %v2744_v18  ;;  %v2784_v49 = vld [vmem:[#allocation8 + $0x18] sm:$0xff]   ;;  %v3705_v50 = vld [vmem:[#allocation16 + $0x20] ss:$16 sps:$4 sm:$0xff]   ;;  %v3713_v52 = vld [vmem:[#allocation16 + $0x4c] ss:$16 sps:$4 sm:$0xff]   ;;  %s4352_s8 = sld [smem:[#allocation63_spill]] }
  0xb6   : > { %2520 = vmatmul.mubr.msk.bf16.vlgmr.msra.gmra.mxu0 %vm514_vm2, %v474_v14  ;;  %1091 = vmatprep.subr.bf16.mxu1 %v3631_v19  ;;  %v3709_v51 = vld [vmem:[#allocation16 + $0x68] ss:$16 sps:$4 sm:$0xff]   ;;  %v3723_v54 = vld [vmem:[#allocation16 + $0x2c] ss:$16 sps:$4 sm:$0xff]   ;;  %v3732_v56 = vld [vmem:[#allocation16 + $0x4] ss:$16 sps:$4 sm:$0xff]  }
  0xb7   : > { %798 = vmatpush1.bf16.msra.mxu0 %v2733_v16  ;;  %821 = vmatprep.mubr.bf16.mxu0 %v4306_v7  ;;  %v3719_v53 = vld [vmem:[#allocation16 + $0x48] ss:$16 sps:$4 sm:$0xff]   ;;  %v3734_v57 = vld [vmem:[#allocation16 + $0xc] ss:$16 sps:$4 sm:$0xff]   ;;  %v3736_v58 = vld [vmem:[#allocation16] ss:$16 sps:$4 sm:$0xff]  }
  0xb8   : > { %799 = vmatprep.subr.bf16.mxu0 %v2741_v17  ;;  %2412 = vmatmul.mubr.msk.bf16.vlgmr.msra.gmra.mxu1 %vm514_vm2, %v2748_v22  ;;  %v3726_v55 = vld [vmem:[#allocation16 + $0x28] ss:$16 sps:$4 sm:$0xff]   ;;  %v2386_v61 = vld [vmem:[%s4351_s25] ss:$0 sm:$0xff]  ;;  %v590_v6 = vsub.s32 1, %v585_v62  ;;  %v594_v17 = vsub.s32 2, %v585_v62 }
  0xb9   : > { %1092 = vmatpush1.bf16.msra.mxu1 %v3634_v23  ;;  %758 = vmatprep.mubr.bf16.mxu1 %v4306_v7  ;;  %v3738_v59 = vld [vmem:[#allocation16 + $0x8] ss:$16 sps:$4 sm:$0xff]  }
  0xba   : > { %1093 = vmatprep.subr.bf16.mxu1 %v3637_v24 }
  0xbb   : > { %800 = vmatpush1.bf16.msra.mxu0 %v2739_v20  ;;  %v582_v5 = vld [vmem:[%s4352_s8] sm:$0xf] }
  0xbc   : > { %801 = vmatprep.subr.bf16.mxu0 %v2747_v21  ;;  %v3760_v10 = vrot.slane %v582_v5, %v586_v3  ;;  %v3768_v12 = vrot.slane %v582_v5, %v590_v6  ;;  %v598_v21 = vsub.s32 3, %v585_v62 }
  0xbd   : > { %1094 = vmatpush1.bf16.msra.mxu1 %v3642_v27 }
  0xbe   : > { %1095 = vmatprep.subr.bf16.mxu1 %v3645_v28  ;;  %4353 = vst [vmem:[#allocation37_spill] sm:$0xff] %v3768_v12 }
  0xbf   : > { %802 = vmatpush1.bf16.msra.mxu0 %v2745_v25 }
  0xc0   : > { %803 = vmatprep.subr.bf16.mxu0 %v2751_v26  ;;  %2413 = vmatmul.mubr.msk.bf16.gmra.mxu1 %vm514_vm2, %v2758_v31  ;;  %v3789_v26 = vrot.slane %v582_v5, %v594_v17 }
  0xc1   : > { %1096 = vmatpush1.bf16.msra.mxu1 %v3650_v32  ;;  %768 = vmatprep.mubr.bf16.mxu1 %v4306_v7 }
  0xc2   : > { %1097 = vmatprep.subr.bf16.mxu1 %v3653_v33 }
  0xc3   : > { %804 = vmatpush1.bf16.msra.mxu0 %v2749_v29 }
  0xc4   : > { %1132 = vmatprep.subr.bf16.mxu0 %v3647_v30 }
  0xc5   : > { %1098 = vmatpush1.bf16.msra.mxu1 %v3663_v36 }
  0xc6   : > { %2416 = vmatmul.mubr.msk.bf16.vlgmr.msra.gmra.mxu0 %vm514_vm2, %v2748_v22  ;;  %1099 = vmatprep.subr.bf16.mxu1 %v3669_v38 }
  0xc7   : > { %1133 = vmatpush1.bf16.msra.mxu0 %v3655_v34  ;;  %831 = vmatprep.mubr.bf16.mxu0 %v4306_v7 }
  0xc8   : > { %1134 = vmatprep.subr.bf16.mxu0 %v3659_v35  ;;  %2414 = vmatmul.mubr.msk.bf16.gmra.mxu1 %vm514_vm2, %v2771_v40 }
  0xc9   : > { %1100 = vmatpush1.bf16.msra.mxu1 %v3677_v41  ;;  %778 = vmatprep.mubr.bf16.mxu1 %v4306_v7 }
  0xca   : > { %1101 = vmatprep.subr.bf16.mxu1 %v3680_v42 }
  0xcb   : > { %1135 = vmatpush1.bf16.msra.mxu0 %v3666_v37 }
  0xcc   : > { %1136 = vmatprep.subr.bf16.mxu0 %v3673_v39 }
  0xcd   : > { %1102 = vmatpush1.bf16.msra.mxu1 %v3691_v45 }
  0xce   : > { %2417 = vmatmul.mubr.msk.bf16.gmra.mxu0 %vm514_vm2, %v2758_v31  ;;  %1103 = vmatprep.subr.bf16.mxu1 %v3695_v46 }
  0xcf   : > { %1137 = vmatpush1.bf16.msra.mxu0 %v3683_v43  ;;  %841 = vmatprep.mubr.bf16.mxu0 %v4306_v7 }
  0xd0   : > { %1138 = vmatprep.subr.bf16.mxu0 %v3687_v44  ;;  %2415 = vmatmul.mubr.msk.bf16.gmra.mxu1 %vm514_vm2, %v2784_v49 }
  0xd1   : > { %1104 = vmatpush1.bf16.msra.mxu1 %v3705_v50  ;;  %1123 = vmatprep.mubr.bf16.mxu1 %v4306_v7 }
  0xd2   : > { %1105 = vmatprep.subr.bf16.mxu1 %v3732_v56 }
  0xd3   : > { %1139 = vmatpush1.bf16.msra.mxu0 %v3698_v47 }
  0xd4   : > { %1140 = vmatprep.subr.bf16.mxu0 %v3702_v48 }
  0xd5   : > { %1106 = vmatpush1.bf16.msra.mxu1 %v3736_v58 }
  0xd6   : > { %2418 = vmatmul.mubr.msk.bf16.gmra.mxu0 %vm514_vm2, %v2771_v40  ;;  %1206 = vmatprep.subr.bf16.mxu1 %v3631_v19 }
  0xd7   : > { %1141 = vmatpush1.bf16.msra.mxu0 %v3709_v51  ;;  %851 = vmatprep.mubr.bf16.mxu0 %v4306_v7 }
  0xd8   : > { %1142 = vmatprep.subr.bf16.mxu0 %v3713_v52 }
  0xdb   : > { %1143 = vmatpush1.bf16.msra.mxu0 %v3719_v53 }
  0xdc   : > { %1144 = vmatprep.subr.bf16.mxu0 %v3723_v54 }
  0xde   : > { %2419 = vmatmul.mubr.msk.bf16.gmra.mxu0 %vm514_vm2, %v2784_v49  ;;  %v3798_v49 = vrot.slane %v582_v5, %v598_v21 }
  0xdf   : > { %1145 = vmatpush1.bf16.msra.mxu0 %v3726_v55  ;;  %1164 = vmatprep.mubr.bf16.mxu0 %v4306_v7 }
  0xe0   : > { %1146 = vmatprep.subr.bf16.mxu0 %v3734_v57 }
  0xe3   : > { %1147 = vmatpush1.bf16.msra.mxu0 %v3738_v59 }
  0xe4   : > { %1247 = vmatprep.subr.bf16.mxu0 %v3647_v30 }
 0x176   : > { %v552_v63 = vpop.f32.mrf.mxu0 }
 0x177   : > { %v3749_v0 = vadd.f32 %v2386_v61, %v552_v63 }
 0x178   : > { %v2521_v1 = vpop.f32.mrf.mxu0  ;;  %v3756_v9 = vpop.f32.mrf.mxu1 }
 0x179   : > { %v898_v2 = vpack.c.bf16 %v3749_v0, %v3749_v0 }
 0x17a   : > { %v555_v4 = vpop.f32.mrf.mxu0  ;;  %v3764_v11 = vpop.f32.mrf.mxu1 }
 0x17b   : > { %1124 = vmatmul.mubr.bf16.vlgmr.msra.gmra.mxu1 %v898_v2  ;;  %1165 = vmatmul.mubr.bf16.vlgmr.msra.gmra.mxu0 %v898_v2 }
 0x17c   : > { %v2522_v8 = vpop.f32.mrf.mxu0  ;;  %1207 = vmatpush1.bf16.msra.mxu1 %v3634_v23  ;;  %1248 = vmatpush1.bf16.msra.mxu0 %v3655_v34  ;;  %v754_v13 = vpop.f32.mrf.mxu1 }
 0x17d   : > { %1208 = vmatprep.subr.bf16.mxu1 %v3637_v24  ;;  %1249 = vmatprep.subr.bf16.mxu0 %v3659_v35  ;;  %v3773_v14 = vadd.f32 %v754_v13, %v3760_v10 }
 0x17e   : > { %1238 = vmatprep.mubr.bf16.mxu1 %v4306_v7  ;;  %1279 = vmatprep.mubr.bf16.mxu0 %v4306_v7  ;;  %v756_v15 = vpop.f32.mrf.mxu1 }
 0x17f   : > { %v3778_v16 = vadd.f32 %v756_v15, %v3768_v12 }
 0x180   : > { %1209 = vmatpush1.bf16.msra.mxu1 %v3642_v27  ;;  %1250 = vmatpush1.bf16.msra.mxu0 %v3666_v37  ;;  %v760_v18 = vpop.f32.mrf.mxu1 }
 0x181   : > { %1210 = vmatprep.subr.bf16.mxu1 %v3645_v28  ;;  %1251 = vmatprep.subr.bf16.mxu0 %v3673_v39  ;;  %v3783_v20 = vadd.f32 %v760_v18, %v3760_v10 }
 0x182   : > { %v762_v25 = vpop.f32.mrf.mxu1 }
 0x183   : > { %v3792_v29 = vadd.f32 %v762_v25, %v3768_v12 }
 0x184   : > { %1211 = vmatpush1.bf16.msra.mxu1 %v3650_v32  ;;  %1252 = vmatpush1.bf16.msra.mxu0 %v3683_v43  ;;  %v764_v40 = vpop.f32.mrf.mxu1 }
 0x185   : > { %1212 = vmatprep.subr.bf16.mxu1 %v3653_v33  ;;  %1253 = vmatprep.subr.bf16.mxu0 %v3687_v44  ;;  %v3801_v60 = vadd.f32 %v764_v40, %v3760_v10 }
 0x186   : > { %v3787_v22 = vpop.f32.mrf.mxu0  ;;  %v766_v62 = vpop.f32.mrf.mxu1 }
 0x187   : > { %4354 = vst [vmem:[#allocation38_spill] sm:$0xff] %v3801_v60  ;;  %v3809_v1 = vadd.f32 %v766_v62, %v3768_v12 }
 0x188   : > { %v3794_v31 = vpop.f32.mrf.mxu0  ;;  %1213 = vmatpush1.bf16.msra.mxu1 %v3663_v36  ;;  %1254 = vmatpush1.bf16.msra.mxu0 %v3698_v47  ;;  %v770_v3 = vpop.f32.mrf.mxu1 }
 0x189   : > { %1214 = vmatprep.subr.bf16.mxu1 %v3669_v38  ;;  %1255 = vmatprep.subr.bf16.mxu0 %v3702_v48  ;;  %4355 = vst [vmem:[#allocation39_spill] sm:$0xff] %v3809_v1  ;;  %v3817_v5 = vadd.f32 %v770_v3, %v3760_v10 }
 0x18a   : > { %v827_v61 = vpop.f32.mrf.mxu0  ;;  %v772_v8 = vpop.f32.mrf.mxu1 }
 0x18b   : > { %v3806_v63 = vadd.f32 %v827_v61, %v3789_v26  ;;  %4356 = vst [vmem:[#allocation40_spill] sm:$0xff] %v3817_v5  ;;  %v3825_v15 = vadd.f32 %v772_v8, %v3768_v12 }
 0x18c   : > { %v829_v2 = vpop.f32.mrf.mxu0  ;;  %1215 = vmatpush1.bf16.msra.mxu1 %v3677_v41  ;;  %1256 = vmatpush1.bf16.msra.mxu0 %v3709_v51  ;;  %v774_v18 = vpop.f32.mrf.mxu1 }
 0x18d   : > { %v3814_v4 = vadd.f32 %v829_v2, %v3798_v49  ;;  %1216 = vmatprep.subr.bf16.mxu1 %v3680_v42  ;;  %1257 = vmatprep.subr.bf16.mxu0 %v3713_v52  ;;  %4357 = vst [vmem:[#allocation41_spill] sm:$0xff] %v3825_v15  ;;  %v3833_v25 = vadd.f32 %v774_v18, %v3760_v10 }
 0x18e   : > { %v833_v6 = vpop.f32.mrf.mxu0  ;;  %v776_v61 = vpop.f32.mrf.mxu1 }
 0x18f   : > { %v3822_v13 = vadd.f32 %v833_v6, %v3789_v26  ;;  %4358 = vst [vmem:[#allocation42_spill] sm:$0xff] %v3833_v25  ;;  %v3841_v2 = vadd.f32 %v776_v61, %v3768_v12 }
 0x190   : > { %v835_v17 = vpop.f32.mrf.mxu0  ;;  %1217 = vmatpush1.bf16.msra.mxu1 %v3691_v45  ;;  %1258 = vmatpush1.bf16.msra.mxu0 %v3719_v53  ;;  %v780_v6 = vpop.f32.mrf.mxu1 }
 0x191   : > { %v3830_v21 = vadd.f32 %v835_v17, %v3798_v49  ;;  %1218 = vmatprep.subr.bf16.mxu1 %v3695_v46  ;;  %1259 = vmatprep.subr.bf16.mxu0 %v3723_v54  ;;  %4360 = vst [vmem:[#allocation44_spill] sm:$0xff] %v3841_v2  ;;  %v3849_v17 = vadd.f32 %v780_v6, %v3760_v10 }
 0x192   : > { %v837_v40 = vpop.f32.mrf.mxu0 }
 0x193   : > { %v3838_v62 = vadd.f32 %v837_v40, %v3789_v26  ;;  %4362 = vst [vmem:[#allocation46_spill] sm:$0xff] %v3849_v17  ;;  %v782_v40 = vpop.f32.mrf.mxu1 }
 0x194   : > { %v839_v3 = vpop.f32.mrf.mxu0  ;;  %1219 = vmatpush1.bf16.msra.mxu1 %v3705_v50  ;;  %1260 = vmatpush1.bf16.msra.mxu0 %v3726_v55  ;;  %v3857_v7 = vadd.f32 %v782_v40, %v3768_v12 }
 0x195   : > { %4359 = vst [vmem:[#allocation43_spill] sm:$0xff] %v3838_v62  ;;  %v3846_v8 = vadd.f32 %v839_v3, %v3798_v49  ;;  %1220 = vmatprep.subr.bf16.mxu1 %v3732_v56  ;;  %1261 = vmatprep.subr.bf16.mxu0 %v3734_v57  ;;  %v784_v25 = vpop.f32.mrf.mxu1 }
 0x196   : > { %v843_v18 = vpop.f32.mrf.mxu0  ;;  %4364 = vst [vmem:[#allocation48_spill] sm:$0xff] %v3857_v7  ;;  %v3865_v6 = vadd.f32 %v784_v25, %v3760_v10 }
 0x197   : > { %4361 = vst [vmem:[#allocation45_spill] sm:$0xff] %v3846_v8  ;;  %v3854_v61 = vadd.f32 %v843_v18, %v3789_v26 }
 0x198   : > { %v845_v2 = vpop.f32.mrf.mxu0  ;;  %1221 = vmatpush1.bf16.msra.mxu1 %v3736_v58  ;;  %1262 = vmatpush1.bf16.msra.mxu0 %v3738_v59  ;;  %4366 = vst [vmem:[#allocation50_spill] sm:$0xff] %v3865_v6 }
 0x199   : > { %4363 = vst [vmem:[#allocation47_spill] sm:$0xff] %v3854_v61  ;;  %v3862_v3 = vadd.f32 %v845_v2, %v3798_v49  ;;  %1321 = vmatprep.subr.bf16.mxu1 %v3631_v19  ;;  %1362 = vmatprep.subr.bf16.mxu0 %v3647_v30 }
 0x19a   : > { %v847_v18 = vpop.f32.mrf.mxu0 }
 0x19b   : > { %4365 = vst [vmem:[#allocation49_spill] sm:$0xff] %v3862_v3  ;;  %v3870_v40 = vadd.f32 %v847_v18, %v3789_v26  ;;  %v3886_v18 = vpop.f32.mrf.mxu1 }
 0x19c   : > { %v849_v7 = vpop.f32.mrf.mxu0  ;;  %4373 = vst [vmem:[#allocation57_spill] sm:$0xff] %v3886_v18  ;;  %v824_v18 = vadd.f32 %v3787_v22, %v3789_v26 }
 0x19d   : > { %4367 = vst [vmem:[#allocation51_spill] sm:$0xff] %v3870_v40  ;;  %v3873_v17 = vadd.f32 %v849_v7, %v3798_v49  ;;  %v751_v7 = vadd.f32 %v3756_v9, %v3760_v10  ;;  %v826_v9 = vadd.f32 %v3794_v31, %v3798_v49 }
 0x19e   : > { %v853_v61 = vpop.f32.mrf.mxu0 }
 0x19f   : > { %4368 = vst [vmem:[#allocation52_spill] sm:$0xff] %v3873_v17  ;;  %v3876_v15 = vadd.f32 %v853_v61, %v3789_v26  ;;  %v753_v61 = vadd.f32 %v3764_v11, %v3768_v12 }
 0x1a0   : > { %v855_v2 = vpop.f32.mrf.mxu0 }
 0x1a1   : > { %4369 = vst [vmem:[#allocation53_spill] sm:$0xff] %v3876_v15  ;;  %v3879_v25 = vadd.f32 %v855_v2, %v3798_v49 }
 0x1a2   : > { %v857_v6 = vpop.f32.mrf.mxu0 }
 0x1a3   : > { %4370 = vst [vmem:[#allocation54_spill] sm:$0xff] %v3879_v25  ;;  %v3882_v3 = vadd.f32 %v857_v6, %v3789_v26 }
 0x1a4   : > { %v3884_v5 = vpop.f32.mrf.mxu0 }
 0x1a5   : > { %4371 = vst [vmem:[#allocation55_spill] sm:$0xff] %v3882_v3  ;;  %4372 = vst [vmem:[#allocation56_spill] sm:$0xff] %v3884_v5 }
 0x23b   : > { %v1125_v40 = vpop.f32.mrf.mxu1  ;;  %v1166_v17 = vpop.f32.mrf.mxu0 }
 0x23c   : > { %v1173_v15 = vadd.f32 %v1125_v40, %v751_v7  ;;  %v1175_v7 = vadd.f32 %v1166_v17, %v824_v18 }
 0x23d   : > { %v1127_v62 = vpop.f32.mrf.mxu1  ;;  %v1168_v2 = vpop.f32.mrf.mxu0 }
 0x23e   : > { %v2452_v25 = vmul.f32 -1.442695, %v1173_v15  ;;  %v1174_v8 = vadd.f32 %v1127_v62, %v753_v61  ;;  %v1176_v10 = vadd.f32 %v1168_v2, %v826_v9 }
 0x23f   : > { %v1129_v1 = vpop.f32.mrf.mxu1  ;;  %v1170_v6 = vpop.f32.mrf.mxu0 }
 0x240   : > { %2803 = vpow2.f32 %v2452_v25  ;;  %v2453_v3 = vmul.f32 -1.442695, %v1174_v8  ;;  %v2454_v11 = vmul.f32 -1.442695, %v1176_v10 }
 0x241   : > { %v1130_v5 = vpop.f32.mrf.mxu1  ;;  %v1171_v60 = vpop.f32.mrf.mxu0 }
 0x242   : > { %2805 = vpow2.f32 %v2453_v3 }
 0x243   : > { %2807 = vpow2.f32 %v2454_v11 }
 0x24d   : > { %v2804_v40 = vpop.eup %2803 }
 0x24e   : > { %v1180_v12 = vadd.f32 1.0, %v2804_v40 }
 0x24f   : > { %v2806_v15 = vpop.eup %2805 }
 0x250   : > { %2809 = vrcp.f32 %v1180_v12  ;;  %v1186_v1 = vadd.f32 1.0, %v2806_v15  ;;  %v2808_v5 = vpop.eup %2807 }
 0x251   : > { %2811 = vtanh.f32 %v1175_v7  ;;  %v1193_v3 = vadd.f32 1.0, %v2808_v5 }
 0x252   : > { %2813 = vrcp.f32 %v1186_v1 }
 0x253   : > { %2815 = vrcp.f32 %v1193_v3 }
 0x25d   : > { %v2810_v60 = vpop.eup %2809 }
 0x25e   : > { %v2812_v62 = vpop.eup %2811 }
 0x25f   : > { %v2814_v8 = vpop.eup %2813  ;;  %v1197_v31 = vmul.f32 %v2812_v62, %v2810_v60 }
 0x260   : > { %v1196_v25 = vmul.f32 %v2814_v8, %v3749_v0  ;;  %v2816_v22 = vpop.eup %2815  ;;  %v4374_v0 = vmov 0  }
 0x262   : > { %v3897_v61 = vadd.f32 %v1197_v31, %v1196_v25 }
 0x264   : > { %2817 = vtanh.f32 %v3897_v61 }
 0x271   : > { %v2818_v26 = vpop.eup %2817 }
 0x272   : > { %v1200_v17 = vmul.f32 %v2818_v26, %v2816_v22 }
 0x274   : > { %v1205_v12 = vpack.c.bf16 %v1200_v17, %v1200_v17 }
 0x276   : > { %1239 = vmatmul.mubr.bf16.vlgmr.msra.gmra.mxu1 %v1205_v12  ;;  %1280 = vmatmul.mubr.bf16.vlgmr.msra.gmra.mxu0 %v1205_v12 }
 0x277   : > { %1322 = vmatpush1.bf16.msra.mxu1 %v3634_v23  ;;  %1363 = vmatpush1.bf16.msra.mxu0 %v3655_v34 }
 0x278   : > { %1323 = vmatprep.subr.bf16.mxu1 %v3637_v24  ;;  %1364 = vmatprep.subr.bf16.mxu0 %v3659_v35 }
 0x279   : > { %1353 = vmatprep.mubr.bf16.mxu1 %v4374_v0  ;;  %1394 = vmatprep.mubr.bf16.mxu0 %v4374_v0 }
 0x27b   : > { %1324 = vmatpush1.bf16.msra.mxu1 %v3642_v27  ;;  %1365 = vmatpush1.bf16.msra.mxu0 %v3666_v37 }
 0x27c   : > { %1325 = vmatprep.subr.bf16.mxu1 %v3645_v28  ;;  %1366 = vmatprep.subr.bf16.mxu0 %v3673_v39 }
 0x27f   : > { %1326 = vmatpush1.bf16.msra.mxu1 %v3650_v32  ;;  %1367 = vmatpush1.bf16.msra.mxu0 %v3683_v43 }
 0x280   : > { %1327 = vmatprep.subr.bf16.mxu1 %v3653_v33  ;;  %1368 = vmatprep.subr.bf16.mxu0 %v3687_v44 }
 0x283   : > { %1328 = vmatpush1.bf16.msra.mxu1 %v3663_v36  ;;  %1369 = vmatpush1.bf16.msra.mxu0 %v3698_v47 }
 0x284   : > { %1329 = vmatprep.subr.bf16.mxu1 %v3669_v38  ;;  %1370 = vmatprep.subr.bf16.mxu0 %v3702_v48 }
 0x287   : > { %1330 = vmatpush1.bf16.msra.mxu1 %v3677_v41  ;;  %1371 = vmatpush1.bf16.msra.mxu0 %v3709_v51 }
 0x288   : > { %1331 = vmatprep.subr.bf16.mxu1 %v3680_v42  ;;  %1372 = vmatprep.subr.bf16.mxu0 %v3713_v52 }
 0x28b   : > { %1332 = vmatpush1.bf16.msra.mxu1 %v3691_v45  ;;  %1373 = vmatpush1.bf16.msra.mxu0 %v3719_v53 }
 0x28c   : > { %1333 = vmatprep.subr.bf16.mxu1 %v3695_v46  ;;  %1374 = vmatprep.subr.bf16.mxu0 %v3723_v54 }
 0x28f   : > { %1334 = vmatpush1.bf16.msra.mxu1 %v3705_v50  ;;  %1375 = vmatpush1.bf16.msra.mxu0 %v3726_v55 }
 0x290   : > { %1335 = vmatprep.subr.bf16.mxu1 %v3732_v56  ;;  %1376 = vmatprep.subr.bf16.mxu0 %v3734_v57 }
 0x293   : > { %1336 = vmatpush1.bf16.msra.mxu1 %v3736_v58  ;;  %1377 = vmatpush1.bf16.msra.mxu0 %v3738_v59 }
 0x294   : > { %1436 = vmatprep.subr.bf16.mxu1 %v3631_v19  ;;  %1477 = vmatprep.subr.bf16.mxu0 %v3647_v30 }
 0x336   : > { %v1240_v18 = vpop.f32.mrf.mxu1  ;;  %v1281_v2 = vpop.f32.mrf.mxu0 }
 0x337   : > { %v1288_v6 = vadd.f32 %v1240_v18, %v3773_v14  ;;  %v1290_v8 = vadd.f32 %v1281_v2, %v3806_v63 }
 0x338   : > { %v1242_v9 = vpop.f32.mrf.mxu1  ;;  %v1283_v10 = vpop.f32.mrf.mxu0 }
 0x339   : > { %v2455_v11 = vmul.f32 -1.442695, %v1288_v6  ;;  %v1289_v40 = vadd.f32 %v1242_v9, %v3778_v16  ;;  %v1291_v62 = vadd.f32 %v1283_v10, %v3814_v4 }
 0x33a   : > { %v1244_v7 = vpop.f32.mrf.mxu1  ;;  %v1285_v15 = vpop.f32.mrf.mxu0 }
 0x33b   : > { %2819 = vpow2.f32 %v2455_v11  ;;  %v2456_v1 = vmul.f32 -1.442695, %v1289_v40  ;;  %v2457_v3 = vmul.f32 -1.442695, %v1291_v62 }
 0x33c   : > { %v1245_v5 = vpop.f32.mrf.mxu1  ;;  %v1286_v60 = vpop.f32.mrf.mxu0 }
 0x33d   : > { %2821 = vpow2.f32 %v2456_v1 }
 0x33e   : > { %2823 = vtanh.f32 %v1290_v8 }
 0x33f   : > { %2825 = vpow2.f32 %v2457_v3 }
 0x348   : > { %v2820_v31 = vpop.eup %2819 }
 0x349   : > { %v1295_v25 = vadd.f32 1.0, %v2820_v31 }
 0x34a   : > { %v2822_v14 = vpop.eup %2821 }
 0x34b   : > { %2827 = vrcp.f32 %v1295_v25  ;;  %v1301_v22 = vadd.f32 1.0, %v2822_v14  ;;  %v2824_v16 = vpop.eup %2823 }
 0x34c   : > { %v2826_v26 = vpop.eup %2825 }
 0x34d   : > { %2829 = vrcp.f32 %v1301_v22  ;;  %v1308_v6 = vadd.f32 1.0, %v2826_v26 }
 0x34f   : > { %2831 = vrcp.f32 %v1308_v6 }
 0x358   : > { %v2828_v17 = vpop.eup %2827 }
 0x359   : > { %v1312_v12 = vmul.f32 %v2828_v17, %v2824_v16 }
 0x35a   : > { %v2830_v18 = vpop.eup %2829 }
 0x35b   : > { %v1311_v9 = vmul.f32 %v2830_v18, %v3897_v61 }
 0x35c   : > { %v2832_v63 = vpop.eup %2831 }
 0x35d   : > { %v3939_v4 = vadd.f32 %v1312_v12, %v1311_v9 }
 0x35f   : > { %2833 = vtanh.f32 %v3939_v4 }
 0x36c   : > { %v2834_v2 = vpop.eup %2833 }
 0x36d   : > { %v1315_v10 = vmul.f32 %v2834_v2, %v2832_v63 }
 0x36f   : > { %v1320_v11 = vpack.c.bf16 %v1315_v10, %v1315_v10 }
 0x371   : > { %1354 = vmatmul.mubr.bf16.vlgmr.msra.gmra.mxu1 %v1320_v11  ;;  %1395 = vmatmul.mubr.bf16.vlgmr.msra.gmra.mxu0 %v1320_v11 }
 0x372   : > { %1437 = vmatpush1.bf16.msra.mxu1 %v3634_v23  ;;  %1478 = vmatpush1.bf16.msra.mxu0 %v3655_v34 }
 0x373   : > { %1438 = vmatprep.subr.bf16.mxu1 %v3637_v24  ;;  %1479 = vmatprep.subr.bf16.mxu0 %v3659_v35 }
 0x374   : > { %1468 = vmatprep.mubr.bf16.mxu1 %v4374_v0  ;;  %1509 = vmatprep.mubr.bf16.mxu0 %v4374_v0 }
 0x376   : > { %1439 = vmatpush1.bf16.msra.mxu1 %v3642_v27  ;;  %1480 = vmatpush1.bf16.msra.mxu0 %v3666_v37 }
 0x377   : > { %1440 = vmatprep.subr.bf16.mxu1 %v3645_v28  ;;  %1481 = vmatprep.subr.bf16.mxu0 %v3673_v39 }
 0x37a   : > { %1441 = vmatpush1.bf16.msra.mxu1 %v3650_v32  ;;  %1482 = vmatpush1.bf16.msra.mxu0 %v3683_v43 }
 0x37b   : > { %1442 = vmatprep.subr.bf16.mxu1 %v3653_v33  ;;  %1483 = vmatprep.subr.bf16.mxu0 %v3687_v44 }
 0x37e   : > { %1443 = vmatpush1.bf16.msra.mxu1 %v3663_v36  ;;  %1484 = vmatpush1.bf16.msra.mxu0 %v3698_v47 }
 0x37f   : > { %1444 = vmatprep.subr.bf16.mxu1 %v3669_v38  ;;  %1485 = vmatprep.subr.bf16.mxu0 %v3702_v48 }
 0x382   : > { %1445 = vmatpush1.bf16.msra.mxu1 %v3677_v41  ;;  %1486 = vmatpush1.bf16.msra.mxu0 %v3709_v51 }
 0x383   : > { %1446 = vmatprep.subr.bf16.mxu1 %v3680_v42  ;;  %1487 = vmatprep.subr.bf16.mxu0 %v3713_v52 }
 0x386   : > { %1447 = vmatpush1.bf16.msra.mxu1 %v3691_v45  ;;  %1488 = vmatpush1.bf16.msra.mxu0 %v3719_v53 }
 0x387   : > { %1448 = vmatprep.subr.bf16.mxu1 %v3695_v46  ;;  %1489 = vmatprep.subr.bf16.mxu0 %v3723_v54 }
 0x38a   : > { %1449 = vmatpush1.bf16.msra.mxu1 %v3705_v50  ;;  %1490 = vmatpush1.bf16.msra.mxu0 %v3726_v55 }
 0x38b   : > { %1450 = vmatprep.subr.bf16.mxu1 %v3732_v56  ;;  %1491 = vmatprep.subr.bf16.mxu0 %v3734_v57 }
 0x38e   : > { %1451 = vmatpush1.bf16.msra.mxu1 %v3736_v58  ;;  %1492 = vmatpush1.bf16.msra.mxu0 %v3738_v59 }
 0x38f   : > { %1551 = vmatprep.subr.bf16.mxu1 %v3631_v19  ;;  %1592 = vmatprep.subr.bf16.mxu0 %v3647_v30 }
 0x431   : > { %v1355_v61 = vpop.f32.mrf.mxu1  ;;  %v1396_v40 = vpop.f32.mrf.mxu0 }
 0x432   : > { %v1403_v7 = vadd.f32 %v1355_v61, %v3783_v20  ;;  %v1405_v22 = vadd.f32 %v1396_v40, %v3822_v13 }
 0x433   : > { %v1357_v15 = vpop.f32.mrf.mxu1  ;;  %v1398_v1 = vpop.f32.mrf.mxu0 }
 0x434   : > { %v2458_v5 = vmul.f32 -1.442695, %v1403_v7  ;;  %v1404_v60 = vadd.f32 %v1357_v15, %v3792_v29  ;;  %v1406_v14 = vadd.f32 %v1398_v1, %v3830_v21  ;;  %v4375_v15 = vld [vmem:[#allocation38_spill] sm:$0xff] }
 0x435   : > { %v1359_v62 = vpop.f32.mrf.mxu1  ;;  %v1400_v8 = vpop.f32.mrf.mxu0 }
 0x436   : > { %2835 = vpow2.f32 %v2458_v5  ;;  %v2459_v3 = vmul.f32 -1.442695, %v1404_v60  ;;  %v2460_v16 = vmul.f32 -1.442695, %v1406_v14  ;;  %v4376_v8 = vld [vmem:[#allocation39_spill] sm:$0xff] }
 0x437   : > { %v1360_v31 = vpop.f32.mrf.mxu1  ;;  %v1401_v25 = vpop.f32.mrf.mxu0 }
 0x438   : > { %2837 = vpow2.f32 %v2459_v3 }
 0x439   : > { %2839 = vtanh.f32 %v1405_v22 }
 0x43a   : > { %2841 = vpow2.f32 %v2460_v16 }
 0x443   : > { %v2836_v26 = vpop.eup %2835 }
 0x444   : > { %v1410_v17 = vadd.f32 1.0, %v2836_v26  ;;  %v4377_v26 = vld [vmem:[#allocation45_spill] sm:$0xff] }
 0x445   : > { %v2838_v20 = vpop.eup %2837 }
 0x446   : > { %2843 = vrcp.f32 %v1410_v17  ;;  %v1416_v12 = vadd.f32 1.0, %v2838_v20  ;;  %v2840_v29 = vpop.eup %2839  ;;  %v4378_v17 = vld [vmem:[#allocation43_spill] sm:$0xff] }
 0x447   : > { %v2842_v18 = vpop.eup %2841 }
 0x448   : > { %2845 = vrcp.f32 %v1416_v12  ;;  %v1423_v2 = vadd.f32 1.0, %v2842_v18 }
 0x44a   : > { %2847 = vrcp.f32 %v1423_v2 }
 0x453   : > { %v2844_v6 = vpop.eup %2843 }
 0x454   : > { %v1427_v9 = vmul.f32 %v2844_v6, %v2840_v29 }
 0x455   : > { %v2846_v63 = vpop.eup %2845 }
 0x456   : > { %v1426_v10 = vmul.f32 %v2846_v63, %v3939_v4 }
 0x457   : > { %v2848_v13 = vpop.eup %2847 }
 0x458   : > { %v3981_v21 = vadd.f32 %v1427_v9, %v1426_v10 }
 0x45a   : > { %2849 = vtanh.f32 %v3981_v21 }
 0x467   : > { %v2850_v11 = vpop.eup %2849 }
 0x468   : > { %v1430_v61 = vmul.f32 %v2850_v11, %v2848_v13 }
 0x46a   : > { %v1435_v40 = vpack.c.bf16 %v1430_v61, %v1430_v61 }
 0x46c   : > { %1469 = vmatmul.mubr.bf16.vlgmr.msra.gmra.mxu1 %v1435_v40  ;;  %1510 = vmatmul.mubr.bf16.vlgmr.msra.gmra.mxu0 %v1435_v40 }
 0x46d   : > { %1552 = vmatpush1.bf16.msra.mxu1 %v3634_v23  ;;  %1593 = vmatpush1.bf16.msra.mxu0 %v3655_v34 }
 0x46e   : > { %1553 = vmatprep.subr.bf16.mxu1 %v3637_v24  ;;  %1594 = vmatprep.subr.bf16.mxu0 %v3659_v35 }
 0x46f   : > { %1583 = vmatprep.mubr.bf16.mxu1 %v4374_v0  ;;  %1624 = vmatprep.mubr.bf16.mxu0 %v4374_v0 }
 0x471   : > { %1554 = vmatpush1.bf16.msra.mxu1 %v3642_v27  ;;  %1595 = vmatpush1.bf16.msra.mxu0 %v3666_v37 }
 0x472   : > { %1555 = vmatprep.subr.bf16.mxu1 %v3645_v28  ;;  %1596 = vmatprep.subr.bf16.mxu0 %v3673_v39 }
 0x475   : > { %1556 = vmatpush1.bf16.msra.mxu1 %v3650_v32  ;;  %1597 = vmatpush1.bf16.msra.mxu0 %v3683_v43 }
 0x476   : > { %1557 = vmatprep.subr.bf16.mxu1 %v3653_v33  ;;  %1598 = vmatprep.subr.bf16.mxu0 %v3687_v44 }
 0x479   : > { %1558 = vmatpush1.bf16.msra.mxu1 %v3663_v36  ;;  %1599 = vmatpush1.bf16.msra.mxu0 %v3698_v47 }
 0x47a   : > { %1559 = vmatprep.subr.bf16.mxu1 %v3669_v38  ;;  %1600 = vmatprep.subr.bf16.mxu0 %v3702_v48 }
 0x47d   : > { %1560 = vmatpush1.bf16.msra.mxu1 %v3677_v41  ;;  %1601 = vmatpush1.bf16.msra.mxu0 %v3709_v51 }
 0x47e   : > { %1561 = vmatprep.subr.bf16.mxu1 %v3680_v42  ;;  %1602 = vmatprep.subr.bf16.mxu0 %v3713_v52 }
 0x481   : > { %1562 = vmatpush1.bf16.msra.mxu1 %v3691_v45  ;;  %1603 = vmatpush1.bf16.msra.mxu0 %v3719_v53 }
 0x482   : > { %1563 = vmatprep.subr.bf16.mxu1 %v3695_v46  ;;  %1604 = vmatprep.subr.bf16.mxu0 %v3723_v54 }
 0x485   : > { %1564 = vmatpush1.bf16.msra.mxu1 %v3705_v50  ;;  %1605 = vmatpush1.bf16.msra.mxu0 %v3726_v55 }
 0x486   : > { %1565 = vmatprep.subr.bf16.mxu1 %v3732_v56  ;;  %1606 = vmatprep.subr.bf16.mxu0 %v3734_v57 }
 0x489   : > { %1566 = vmatpush1.bf16.msra.mxu1 %v3736_v58  ;;  %1607 = vmatpush1.bf16.msra.mxu0 %v3738_v59 }
 0x48a   : > { %1666 = vmatprep.subr.bf16.mxu1 %v3631_v19  ;;  %1707 = vmatprep.subr.bf16.mxu0 %v3647_v30 }
 0x52c   : > { %v1470_v4 = vpop.f32.mrf.mxu1  ;;  %v1511_v7 = vpop.f32.mrf.mxu0 }
 0x52d   : > { %v1518_v1 = vadd.f32 %v1470_v4, %v4375_v15  ;;  %v1520_v20 = vadd.f32 %v1511_v7, %v4378_v17 }
 0x52e   : > { %v1472_v5 = vpop.f32.mrf.mxu1  ;;  %v1513_v60 = vpop.f32.mrf.mxu0 }
 0x52f   : > { %v2461_v62 = vmul.f32 -1.442695, %v1518_v1  ;;  %v1519_v3 = vadd.f32 %v1472_v5, %v4376_v8  ;;  %v1521_v19 = vadd.f32 %v1513_v60, %v4377_v26 }
 0x530   : > { %v1474_v31 = vpop.f32.mrf.mxu1  ;;  %v1515_v25 = vpop.f32.mrf.mxu0 }
 0x531   : > { %2851 = vpow2.f32 %v2461_v62  ;;  %v2462_v14 = vmul.f32 -1.442695, %v1519_v3  ;;  %v2463_v12 = vmul.f32 -1.442695, %v1521_v19 }
 0x532   : > { %v1475_v22 = vpop.f32.mrf.mxu1  ;;  %v1516_v16 = vpop.f32.mrf.mxu0 }
 0x533   : > { %2853 = vpow2.f32 %v2462_v14 }
 0x534   : > { %2855 = vtanh.f32 %v1520_v20 }
 0x535   : > { %2857 = vpow2.f32 %v2463_v12 }
 0x53e   : > { %v2852_v29 = vpop.eup %2851 }
 0x53f   : > { %v1525_v18 = vadd.f32 1.0, %v2852_v29 }
 0x540   : > { %v2854_v6 = vpop.eup %2853 }
 0x541   : > { %2859 = vrcp.f32 %v1525_v18  ;;  %v1531_v9 = vadd.f32 1.0, %v2854_v6  ;;  %v2856_v63 = vpop.eup %2855  ;;  %v4070_v18 = vld [vmem:[#allocation16 + $0xe0] ss:$16 sps:$4 sm:$0xff]   ;;  %v4073_v6 = vld [vmem:[#allocation16 + $0xe8] ss:$16 sps:$4 sm:$0xff]  }
 0x542   : > { %v2858_v2 = vpop.eup %2857 }
 0x543   : > { %2861 = vrcp.f32 %v1531_v9  ;;  %v1538_v61 = vadd.f32 1.0, %v2858_v2  ;;  %v4076_v9 = vld [vmem:[#allocation16 + $0xc4] ss:$16 sps:$4 sm:$0xff]   ;;  %v4084_v2 = vld [vmem:[#allocation16 + $0xc0] ss:$16 sps:$4 sm:$0xff]  }
 0x545   : > { %2863 = vrcp.f32 %v1538_v61  ;;  %v4096_v61 = vld [vmem:[#allocation16 + $0xa0] ss:$16 sps:$4 sm:$0xff]  }
 0x54e   : > { %v2860_v10 = vpop.eup %2859 }
 0x54f   : > { %v1542_v13 = vmul.f32 %v2860_v10, %v2856_v63  ;;  %v4079_v63 = vld [vmem:[#allocation16 + $0xcc] ss:$16 sps:$4 sm:$0xff]   ;;  %v4087_v10 = vld [vmem:[#allocation16 + $0xc8] ss:$16 sps:$4 sm:$0xff]  }
 0x550   : > { %v2862_v11 = vpop.eup %2861 }
 0x551   : > { %v1541_v40 = vmul.f32 %v2862_v11, %v3981_v21  ;;  %v4093_v11 = vld [vmem:[#allocation16 + $0xac] ss:$16 sps:$4 sm:$0xff]  }
 0x552   : > { %v2864_v7 = vpop.eup %2863 }
 0x553   : > { %v4023_v4 = vadd.f32 %v1542_v13, %v1541_v40  ;;  %v4090_v13 = vld [vmem:[#allocation16 + $0xa4] ss:$16 sps:$4 sm:$0xff]   ;;  %v4099_v40 = vld [vmem:[#allocation16 + $0xa8] ss:$16 sps:$4 sm:$0xff]  }
 0x555   : > { %2865 = vtanh.f32 %v4023_v4 }
 0x562   : > { %v2866_v15 = vpop.eup %2865 }
 0x563   : > { %v1545_v1 = vmul.f32 %v2866_v15, %v2864_v7  ;;  %v4105_v7 = vld [vmem:[#allocation16 + $0x8c] ss:$16 sps:$4 sm:$0xff]   ;;  %v4108_v15 = vld [vmem:[#allocation16 + $0x80] ss:$16 sps:$4 sm:$0xff]  }
 0x565   : > { %v1550_v5 = vpack.c.bf16 %v1545_v1, %v1545_v1  ;;  %v4112_v1 = vld [vmem:[#allocation16 + $0x64] ss:$16 sps:$4 sm:$0xff]  }
 0x567   : > { %1584 = vmatmul.mubr.bf16.vlgmr.msra.gmra.mxu1 %v1550_v5  ;;  %1625 = vmatmul.mubr.bf16.vlgmr.msra.gmra.mxu0 %v1550_v5  ;;  %v4116_v5 = vld [vmem:[#allocation16 + $0x60] ss:$16 sps:$4 sm:$0xff]  }
 0x568   : > { %1667 = vmatpush1.bf16.msra.mxu1 %v3634_v23  ;;  %1708 = vmatpush1.bf16.msra.mxu0 %v3655_v34  ;;  %v4058_v23 = vld [vmem:[#allocation16 + $0xe4] ss:$16 sps:$4 sm:$0xff]  }
 0x569   : > { %1668 = vmatprep.subr.bf16.mxu1 %v3637_v24  ;;  %1709 = vmatprep.subr.bf16.mxu0 %v3659_v35 }
 0x56a   : > { %1698 = vmatprep.mubr.bf16.mxu1 %v4374_v0  ;;  %1739 = vmatprep.mubr.bf16.mxu0 %v4374_v0 }
 0x56c   : > { %1669 = vmatpush1.bf16.msra.mxu1 %v3642_v27  ;;  %1710 = vmatpush1.bf16.msra.mxu0 %v3666_v37 }
 0x56d   : > { %1670 = vmatprep.subr.bf16.mxu1 %v3645_v28  ;;  %1711 = vmatprep.subr.bf16.mxu0 %v3673_v39  ;;  %v4379_v28 = vld [vmem:[#allocation40_spill] sm:$0xff] }
 0x570   : > { %1671 = vmatpush1.bf16.msra.mxu1 %v3650_v32  ;;  %1712 = vmatpush1.bf16.msra.mxu0 %v3683_v43 }
 0x571   : > { %1672 = vmatprep.subr.bf16.mxu1 %v3653_v33  ;;  %1713 = vmatprep.subr.bf16.mxu0 %v3687_v44  ;;  %v4381_v44 = vld [vmem:[#allocation49_spill] sm:$0xff] }
 0x574   : > { %1673 = vmatpush1.bf16.msra.mxu1 %v3663_v36  ;;  %1714 = vmatpush1.bf16.msra.mxu0 %v3698_v47  ;;  %v4380_v36 = vld [vmem:[#allocation41_spill] sm:$0xff] }
 0x575   : > { %1674 = vmatprep.subr.bf16.mxu1 %v3669_v38  ;;  %1715 = vmatprep.subr.bf16.mxu0 %v3702_v48 }
 0x578   : > { %1675 = vmatpush1.bf16.msra.mxu1 %v3677_v41  ;;  %1716 = vmatpush1.bf16.msra.mxu0 %v3709_v51 }
 0x579   : > { %1676 = vmatprep.subr.bf16.mxu1 %v3680_v42  ;;  %1717 = vmatprep.subr.bf16.mxu0 %v3713_v52 }
 0x57c   : > { %1677 = vmatpush1.bf16.msra.mxu1 %v3691_v45  ;;  %1718 = vmatpush1.bf16.msra.mxu0 %v3719_v53 }
 0x57d   : > { %1678 = vmatprep.subr.bf16.mxu1 %v3695_v46  ;;  %1719 = vmatprep.subr.bf16.mxu0 %v3723_v54  ;;  %v4382_v46 = vld [vmem:[#allocation47_spill] sm:$0xff] }
 0x580   : > { %1679 = vmatpush1.bf16.msra.mxu1 %v3705_v50  ;;  %1720 = vmatpush1.bf16.msra.mxu0 %v3726_v55 }
 0x581   : > { %1680 = vmatprep.subr.bf16.mxu1 %v3732_v56  ;;  %1721 = vmatprep.subr.bf16.mxu0 %v3734_v57 }
 0x584   : > { %1681 = vmatpush1.bf16.msra.mxu1 %v3736_v58  ;;  %1722 = vmatpush1.bf16.msra.mxu0 %v3738_v59 }
 0x585   : > { %1781 = vmatprep.subr.bf16.mxu1 %v4058_v23  ;;  %1822 = vmatprep.subr.bf16.mxu0 %v3647_v30 }
 0x627   : > { %v1585_v24 = vpop.f32.mrf.mxu1  ;;  %v1626_v27 = vpop.f32.mrf.mxu0 }
 0x628   : > { %v1633_v32 = vadd.f32 %v1585_v24, %v4379_v28  ;;  %v1635_v30 = vadd.f32 %v1626_v27, %v4382_v46  ;;  %v4120_v24 = vld [vmem:[#allocation16 + $0x44] ss:$16 sps:$4 sm:$0xff]   ;;  %v4124_v27 = vld [vmem:[#allocation16 + $0x40] ss:$16 sps:$4 sm:$0xff]  }
 0x629   : > { %v1587_v33 = vpop.f32.mrf.mxu1  ;;  %v1628_v34 = vpop.f32.mrf.mxu0 }
 0x62a   : > { %v2464_v35 = vmul.f32 -1.442695, %v1633_v32  ;;  %v1634_v37 = vadd.f32 %v1587_v33, %v4380_v36  ;;  %v1636_v45 = vadd.f32 %v1628_v34, %v4381_v44 }
 0x62b   : > { %v1589_v38 = vpop.f32.mrf.mxu1  ;;  %v1630_v39 = vpop.f32.mrf.mxu0 }
 0x62c   : > { %2867 = vpow2.f32 %v2464_v35  ;;  %v2465_v41 = vmul.f32 -1.442695, %v1634_v37  ;;  %v2466_v50 = vmul.f32 -1.442695, %v1636_v45  ;;  %v4386_v38 = vld [vmem:[#allocation51_spill] sm:$0xff] }
 0x62d   : > { %v1590_v42 = vpop.f32.mrf.mxu1  ;;  %v1631_v43 = vpop.f32.mrf.mxu0 }
 0x62e   : > { %2869 = vpow2.f32 %v2465_v41 }
 0x62f   : > { %2871 = vtanh.f32 %v1635_v30 }
 0x630   : > { %2873 = vpow2.f32 %v2466_v50 }
 0x639   : > { %v2868_v21 = vpop.eup %2867 }
 0x63a   : > { %v1640_v60 = vadd.f32 1.0, %v2868_v21 }
 0x63b   : > { %v2870_v62 = vpop.eup %2869 }
 0x63c   : > { %2875 = vrcp.f32 %v1640_v60  ;;  %v1646_v8 = vadd.f32 1.0, %v2870_v62  ;;  %v2872_v3 = vpop.eup %2871 }
 0x63d   : > { %v2874_v31 = vpop.eup %2873 }
 0x63e   : > { %2877 = vrcp.f32 %v1646_v8  ;;  %v1653_v16 = vadd.f32 1.0, %v2874_v31 }
 0x640   : > { %2879 = vrcp.f32 %v1653_v16  ;;  %v2952_v16 = vld [vmem:[#allocation16 + $0x88] ss:$16 sps:$4 sm:$0xff]  }
 0x649   : > { %v2876_v25 = vpop.eup %2875 }
 0x64a   : > { %v1657_v14 = vmul.f32 %v2876_v25, %v2872_v3 }
 0x64b   : > { %v2878_v22 = vpop.eup %2877 }
 0x64c   : > { %v1656_v26 = vmul.f32 %v2878_v22, %v4023_v4  ;;  %v4102_v4 = vld [vmem:[#allocation16 + $0x84] ss:$16 sps:$4 sm:$0xff]  }
 0x64d   : > { %v2880_v17 = vpop.eup %2879 }
 0x64e   : > { %v4067_v19 = vadd.f32 %v1657_v14, %v1656_v26  ;;  %v2954_v26 = vld [vmem:[#allocation16 + $0x68] ss:$16 sps:$4 sm:$0xff]  }
 0x650   : > { %2881 = vtanh.f32 %v4067_v19 }
 0x65d   : > { %v2882_v20 = vpop.eup %2881 }
 0x65e   : > { %v1660_v12 = vmul.f32 %v2882_v20, %v2880_v17  ;;  %v2956_v17 = vld [vmem:[#allocation16 + $0x48] ss:$16 sps:$4 sm:$0xff]   ;;  %v2957_v20 = vld [vmem:[#allocation16 + $0x2c] ss:$16 sps:$4 sm:$0xff]  }
 0x660   : > { %v1665_v29 = vpack.c.bf16 %v1660_v12, %v1660_v12  ;;  %v2958_v12 = vld [vmem:[#allocation16 + $0x28] ss:$16 sps:$4 sm:$0xff]  }
 0x662   : > { %1699 = vmatmul.mubr.bf16.vlgmr.msra.gmra.mxu1 %v1665_v29  ;;  %1740 = vmatmul.mubr.bf16.vlgmr.msra.gmra.mxu0 %v1665_v29  ;;  %v2959_v29 = vld [vmem:[#allocation16 + $0x4] ss:$16 sps:$4 sm:$0xff]  }
 0x663   : > { %1782 = vmatpush1.bf16.msra.mxu1 %v4070_v18  ;;  %1823 = vmatpush1.bf16.msra.mxu0 %v4073_v6 }
 0x664   : > { %1783 = vmatprep.subr.bf16.mxu1 %v4076_v9  ;;  %1824 = vmatprep.subr.bf16.mxu0 %v4079_v63 }
 0x665   : > { %1813 = vmatprep.mubr.bf16.mxu1 %v4374_v0  ;;  %1854 = vmatprep.mubr.bf16.mxu0 %v4374_v0 }
 0x667   : > { %1784 = vmatpush1.bf16.msra.mxu1 %v4084_v2  ;;  %1825 = vmatpush1.bf16.msra.mxu0 %v4087_v10 }
 0x668   : > { %1785 = vmatprep.subr.bf16.mxu1 %v4090_v13  ;;  %1826 = vmatprep.subr.bf16.mxu0 %v4093_v11 }
 0x66b   : > { %1786 = vmatpush1.bf16.msra.mxu1 %v4096_v61  ;;  %1827 = vmatpush1.bf16.msra.mxu0 %v4099_v40 }
 0x66c   : > { %1787 = vmatprep.subr.bf16.mxu1 %v4102_v4  ;;  %1828 = vmatprep.subr.bf16.mxu0 %v4105_v7 }
 0x66f   : > { %1788 = vmatpush1.bf16.msra.mxu1 %v4108_v15  ;;  %1829 = vmatpush1.bf16.msra.mxu0 %v3698_v47  ;;  %v4128_v47 = vld [vmem:[#allocation16 + $0x24] ss:$16 sps:$4 sm:$0xff]  }
 0x670   : > { %1789 = vmatprep.subr.bf16.mxu1 %v4112_v1  ;;  %1830 = vmatprep.subr.bf16.mxu0 %v3702_v48  ;;  %v4132_v48 = vld [vmem:[#allocation16 + $0x20] ss:$16 sps:$4 sm:$0xff]  }
 0x673   : > { %1790 = vmatpush1.bf16.msra.mxu1 %v4116_v5  ;;  %1831 = vmatpush1.bf16.msra.mxu0 %v3709_v51  ;;  %v2951_v51 = vld [vmem:[#allocation16 + $0xec] ss:$16 sps:$4 sm:$0xff]  }
 0x674   : > { %1791 = vmatprep.subr.bf16.mxu1 %v4120_v24  ;;  %1832 = vmatprep.subr.bf16.mxu0 %v3713_v52 }
 0x677   : > { %1792 = vmatpush1.bf16.msra.mxu1 %v4124_v27  ;;  %1833 = vmatpush1.bf16.msra.mxu0 %v3719_v53 }
 0x678   : > { %1793 = vmatprep.subr.bf16.mxu1 %v4128_v47  ;;  %1834 = vmatprep.subr.bf16.mxu0 %v3723_v54  ;;  %v4383_v54 = vld [vmem:[#allocation42_spill] sm:$0xff] }
 0x67b   : > { %1794 = vmatpush1.bf16.msra.mxu1 %v4132_v48  ;;  %1835 = vmatpush1.bf16.msra.mxu0 %v3726_v55  ;;  %v4384_v55 = vld [vmem:[#allocation44_spill] sm:$0xff] }
 0x67c   : > { %1795 = vmatprep.subr.bf16.mxu1 %v3732_v56  ;;  %1836 = vmatprep.subr.bf16.mxu0 %v3734_v57 }
 0x67f   : > { %1796 = vmatpush1.bf16.msra.mxu1 %v3736_v58  ;;  %1837 = vmatpush1.bf16.msra.mxu0 %v3738_v59  ;;  %v4385_v59 = vld [vmem:[#allocation52_spill] sm:$0xff] }
 0x680   : > { %1896 = vmatprep.subr.bf16.mxu1 %v4058_v23  ;;  %1937 = vmatprep.subr.bf16.mxu0 %v2951_v51  ;;  %v4390_v51 = vld [vmem:[#allocation53_spill] sm:$0xff] }
 0x722   : > { %v1700_v52 = vpop.f32.mrf.mxu1  ;;  %v1741_v53 = vpop.f32.mrf.mxu0 }
 0x723   : > { %v1748_v28 = vadd.f32 %v1700_v52, %v4383_v54  ;;  %v1750_v39 = vadd.f32 %v1741_v53, %v4386_v38 }
 0x724   : > { %v1702_v32 = vpop.f32.mrf.mxu1  ;;  %v1743_v33 = vpop.f32.mrf.mxu0 }
 0x725   : > { %v2467_v34 = vmul.f32 -1.442695, %v1748_v28  ;;  %v1749_v35 = vadd.f32 %v1702_v32, %v4384_v55  ;;  %v1751_v23 = vadd.f32 %v1743_v33, %v4385_v59 }
 0x726   : > { %v1704_v56 = vpop.f32.mrf.mxu1  ;;  %v1745_v36 = vpop.f32.mrf.mxu0 }
 0x727   : > { %2883 = vpow2.f32 %v2467_v34  ;;  %v2468_v57 = vmul.f32 -1.442695, %v1749_v35  ;;  %v2469_v41 = vmul.f32 -1.442695, %v1751_v23 }
 0x728   : > { %v1705_v58 = vpop.f32.mrf.mxu1  ;;  %v1746_v37 = vpop.f32.mrf.mxu0 }
 0x729   : > { %2885 = vpow2.f32 %v2468_v57 }
 0x72a   : > { %2887 = vtanh.f32 %v1750_v39 }
 0x72b   : > { %2889 = vpow2.f32 %v2469_v41 }
 0x734   : > { %v2884_v42 = vpop.eup %2883 }
 0x735   : > { %v1755_v43 = vadd.f32 1.0, %v2884_v42 }
 0x736   : > { %v2886_v44 = vpop.eup %2885 }
 0x737   : > { %2891 = vrcp.f32 %v1755_v43  ;;  %v1761_v45 = vadd.f32 1.0, %v2886_v44  ;;  %v2888_v46 = vpop.eup %2887  ;;  %v4391_v43 = vld [vmem:[#allocation37_spill] sm:$0xff] }
 0x738   : > { %v2890_v30 = vpop.eup %2889  ;;  %v4392_v44 = vld [vmem:[#allocation57_spill] sm:$0xff] }
 0x739   : > { %2893 = vrcp.f32 %v1761_v45  ;;  %v1768_v62 = vadd.f32 1.0, %v2890_v30  ;;  %v787_v45 = vadd.f32 %v4392_v44, %v4391_v43 }
 0x73b   : > { %2895 = vrcp.f32 %v1768_v62 }
 0x744   : > { %v2892_v50 = vpop.eup %2891 }
 0x745   : > { %v1772_v21 = vmul.f32 %v2892_v50, %v2888_v46  ;;  %v4393_v46 = vld [vmem:[#allocation50_spill] sm:$0xff] }
 0x746   : > { %v2894_v60 = vpop.eup %2893 }
 0x747   : > { %v1771_v8 = vmul.f32 %v2894_v60, %v4067_v19  ;;  %v2955_v19 = vld [vmem:[#allocation16 + $0x4c] ss:$16 sps:$4 sm:$0xff]  }
 0x748   : > { %v2896_v31 = vpop.eup %2895 }
 0x749   : > { %v4146_v3 = vadd.f32 %v1772_v21, %v1771_v8 }
 0x74b   : > { %2897 = vtanh.f32 %v4146_v3 }
 0x758   : > { %v2898_v25 = vpop.eup %2897 }
 0x759   : > { %v1775_v14 = vmul.f32 %v2898_v25, %v2896_v31 }
 0x75b   : > { %v1780_v22 = vpack.c.bf16 %v1775_v14, %v1775_v14 }
 0x75d   : > { %1814 = vmatmul.mubr.bf16.vlgmr.msra.gmra.mxu1 %v1780_v22  ;;  %1855 = vmatmul.mubr.bf16.vlgmr.msra.gmra.mxu0 %v1780_v22  ;;  %v4394_v22 = vld [vmem:[#allocation56_spill] sm:$0xff] }
 0x75e   : > { %1897 = vmatpush1.bf16.msra.mxu1 %v4070_v18  ;;  %1938 = vmatpush1.bf16.msra.mxu0 %v4073_v6  ;;  %v2960_v18 = vld [vmem:[#allocation16 + $0xc] ss:$16 sps:$4 sm:$0xff]   ;;  %v2961_v6 = vld [vmem:[#allocation16] ss:$16 sps:$4 sm:$0xff]  }
 0x75f   : > { %1898 = vmatprep.subr.bf16.mxu1 %v4076_v9  ;;  %1939 = vmatprep.subr.bf16.mxu0 %v4079_v63  ;;  %v2962_v9 = vld [vmem:[#allocation16 + $0x8] ss:$16 sps:$4 sm:$0xff]  }
 0x760   : > { %1928 = vmatprep.mubr.bf16.mxu1 %v4374_v0  ;;  %1969 = vmatprep.mubr.bf16.mxu0 %v4374_v0  ;;  %v2953_v0 = vld [vmem:[#allocation16 + $0x6c] ss:$16 sps:$4 sm:$0xff]  }
 0x762   : > { %1899 = vmatpush1.bf16.msra.mxu1 %v4084_v2  ;;  %1940 = vmatpush1.bf16.msra.mxu0 %v4087_v10  ;;  %v4387_v10 = vld [vmem:[#allocation46_spill] sm:$0xff] }
 0x763   : > { %1900 = vmatprep.subr.bf16.mxu1 %v4090_v13  ;;  %1941 = vmatprep.subr.bf16.mxu0 %v4093_v11 }
 0x766   : > { %1901 = vmatpush1.bf16.msra.mxu1 %v4096_v61  ;;  %1942 = vmatpush1.bf16.msra.mxu0 %v4099_v40 }
 0x767   : > { %1902 = vmatprep.subr.bf16.mxu1 %v4102_v4  ;;  %1943 = vmatprep.subr.bf16.mxu0 %v4105_v7  ;;  %v4388_v4 = vld [vmem:[#allocation48_spill] sm:$0xff] }
 0x76a   : > { %1903 = vmatpush1.bf16.msra.mxu1 %v4108_v15  ;;  %1944 = vmatpush1.bf16.msra.mxu0 %v2952_v16  ;;  %v860_v16 = vadd.f32 %v4394_v22, %v3798_v49 }
 0x76b   : > { %1904 = vmatprep.subr.bf16.mxu1 %v4112_v1  ;;  %1945 = vmatprep.subr.bf16.mxu0 %v2953_v0 }
 0x76e   : > { %1905 = vmatpush1.bf16.msra.mxu1 %v4116_v5  ;;  %1946 = vmatpush1.bf16.msra.mxu0 %v2954_v26  ;;  %v4395_v26 = vld [vmem:[#allocation55_spill] sm:$0xff] }
 0x76f   : > { %1906 = vmatprep.subr.bf16.mxu1 %v4120_v24  ;;  %1947 = vmatprep.subr.bf16.mxu0 %v2955_v19 }
 0x772   : > { %1907 = vmatpush1.bf16.msra.mxu1 %v4124_v27  ;;  %1948 = vmatpush1.bf16.msra.mxu0 %v2956_v17 }
 0x773   : > { %1908 = vmatprep.subr.bf16.mxu1 %v4128_v47  ;;  %1949 = vmatprep.subr.bf16.mxu0 %v2957_v20  ;;  %v4389_v47 = vld [vmem:[#allocation54_spill] sm:$0xff] }
 0x776   : > { %1909 = vmatpush1.bf16.msra.mxu1 %v4132_v48  ;;  %1950 = vmatpush1.bf16.msra.mxu0 %v2958_v12 }
 0x777   : > { %1910 = vmatprep.subr.bf16.mxu1 %v2959_v29  ;;  %1951 = vmatprep.subr.bf16.mxu0 %v2960_v18 }
 0x77a   : > { %1911 = vmatpush1.bf16.msra.mxu1 %v2961_v6  ;;  %1952 = vmatpush1.bf16.msra.mxu0 %v2962_v9 }
 0x81d   : > { %v1815_v63 = vpop.f32.mrf.mxu1  ;;  %v1856_v2 = vpop.f32.mrf.mxu0 }
 0x81e   : > { %v1863_v13 = vadd.f32 %v1815_v63, %v4387_v10  ;;  %v1865_v52 = vadd.f32 %v1856_v2, %v4390_v51 }
 0x81f   : > { %v1817_v11 = vpop.f32.mrf.mxu1  ;;  %v1858_v61 = vpop.f32.mrf.mxu0 }
 0x820   : > { %v2470_v40 = vmul.f32 -1.442695, %v1863_v13  ;;  %v1864_v7 = vadd.f32 %v1817_v11, %v4388_v4  ;;  %v1866_v48 = vadd.f32 %v1858_v61, %v4389_v47 }
 0x821   : > { %v1819_v15 = vpop.f32.mrf.mxu1  ;;  %v1860_v1 = vpop.f32.mrf.mxu0 }
 0x822   : > { %2899 = vpow2.f32 %v2470_v40  ;;  %v2471_v5 = vmul.f32 -1.442695, %v1864_v7  ;;  %v2472_v53 = vmul.f32 -1.442695, %v1866_v48 }
 0x823   : > { %v1820_v24 = vpop.f32.mrf.mxu1  ;;  %v1861_v27 = vpop.f32.mrf.mxu0 }
 0x824   : > { %2901 = vpow2.f32 %v2471_v5 }
 0x825   : > { %2903 = vtanh.f32 %v1865_v52 }
 0x826   : > { %2905 = vpow2.f32 %v2472_v53 }
 0x82f   : > { %v2900_v54 = vpop.eup %2899 }
 0x830   : > { %v1870_v28 = vadd.f32 1.0, %v2900_v54 }
 0x831   : > { %v2902_v32 = vpop.eup %2901 }
 0x832   : > { %2907 = vrcp.f32 %v1870_v28  ;;  %v1876_v33 = vadd.f32 1.0, %v2902_v32  ;;  %v2904_v34 = vpop.eup %2903 }
 0x833   : > { %v2906_v55 = vpop.eup %2905 }
 0x834   : > { %2909 = vrcp.f32 %v1876_v33  ;;  %v1883_v57 = vadd.f32 1.0, %v2906_v55 }
 0x836   : > { %2911 = vrcp.f32 %v1883_v57 }
 0x83f   : > { %v2908_v35 = vpop.eup %2907 }
 0x840   : > { %v1887_v56 = vmul.f32 %v2908_v35, %v2904_v34 }
 0x841   : > { %v2910_v36 = vpop.eup %2909 }
 0x842   : > { %v1886_v58 = vmul.f32 %v2910_v36, %v4146_v3 }
 0x843   : > { %v2912_v59 = vpop.eup %2911 }
 0x844   : > { %v1888_v37 = vadd.f32 %v1887_v56, %v1886_v58 }
 0x846   : > { %2913 = vtanh.f32 %v1888_v37 }
 0x853   : > { %v2914_v23 = vpop.eup %2913 }
 0x854   : > { %v1890_v38 = vmul.f32 %v2914_v23, %v2912_v59 }
 0x856   : > { %v1895_v39 = vpack.c.bf16 %v1890_v38, %v1890_v38 }
 0x858   : > { %1929 = vmatmul.mubr.bf16.vlgmr.msra.gmra.mxu1 %v1895_v39  ;;  %1970 = vmatmul.mubr.bf16.vlgmr.msra.gmra.mxu0 %v1895_v39 }
 0x918   : > { %v1930_v41 = vpop.f32.mrf.mxu1  ;;  %v1971_v42 = vpop.f32.mrf.mxu0 }
 0x919   : > { %v1978_v30 = vadd.f32 %v1930_v41, %v4393_v46  ;;  %v1980_v19 = vadd.f32 %v1971_v42, %v4395_v26 }
 0x91a   : > { %v1932_v50 = vpop.f32.mrf.mxu1  ;;  %v1973_v21 = vpop.f32.mrf.mxu0 }
 0x91b   : > { %v2473_v60 = vmul.f32 -1.442695, %v1978_v30  ;;  %v1979_v62 = vadd.f32 %v1932_v50, %v787_v45  ;;  %v1981_v0 = vadd.f32 %v1973_v21, %v860_v16 }
 0x91c   : > { %v1934_v8 = vpop.f32.mrf.mxu1  ;;  %v1975_v3 = vpop.f32.mrf.mxu0 }
 0x91d   : > { %2915 = vpow2.f32 %v2473_v60  ;;  %v2474_v31 = vmul.f32 -1.442695, %v1979_v62  ;;  %v2475_v17 = vmul.f32 -1.442695, %v1981_v0 }
 0x91e   : > { %v1935_v25 = vpop.f32.mrf.mxu1  ;;  %v1976_v14 = vpop.f32.mrf.mxu0 }
 0x91f   : > { %2917 = vpow2.f32 %v2474_v31 }
 0x920   : > { %2919 = vtanh.f32 %v1980_v19 }
 0x921   : > { %2921 = vpow2.f32 %v2475_v17 }
 0x92a   : > { %v2916_v20 = vpop.eup %2915 }
 0x92b   : > { %v1985_v12 = vadd.f32 1.0, %v2916_v20 }
 0x92c   : > { %v2918_v29 = vpop.eup %2917 }
 0x92d   : > { %2923 = vrcp.f32 %v1985_v12  ;;  %v1991_v18 = vadd.f32 1.0, %v2918_v29  ;;  %v2920_v6 = vpop.eup %2919 }
 0x92e   : > { %v2922_v9 = vpop.eup %2921 }
 0x92f   : > { %2925 = vrcp.f32 %v1991_v18  ;;  %v1998_v13 = vadd.f32 1.0, %v2922_v9 }
 0x931   : > { %2927 = vrcp.f32 %v1998_v13 }
 0x93a   : > { %v2924_v63 = vpop.eup %2923 }
 0x93b   : > { %v2002_v2 = vmul.f32 %v2924_v63, %v2920_v6 }
 0x93c   : > { %v2926_v10 = vpop.eup %2925 }
 0x93d   : > { %v2001_v11 = vmul.f32 %v2926_v10, %v1888_v37 }
 0x93e   : > { %v2928_v61 = vpop.eup %2927 }
 0x93f   : > { %v2003_v49 = vadd.f32 %v2002_v2, %v2001_v11 }
 0x941   : > { %2929 = vtanh.f32 %v2003_v49  ;;  %2009 = vst [vmem:[#allocation22] sm:$0xff] %v2003_v49 }
 0x94e   : > { %v2930_v40 = vpop.eup %2929 }
 0x94f   : > { %v2005_v4 = vmul.f32 %v2930_v40, %v2928_v61 }
 0x951   : > { %2006 = vst [vmem:[#allocation3] sm:$0xff] %v2005_v4  ;;  %2008 = vst [vmem:[#allocation20] sm:$0xff] %v2005_v4 }
 0x952 PF: > { %s4396_s21 = sld [smem:[#allocation31_spill]] }
 0x958   : > { %p2476_p10 = scmp.ne.s32.totalorder %s4396_s21, 0 }
 0x959   : > { %s4397_s27 = sld [smem:[#allocation30_spill]] (!%p2476_p10) }
 0x95a   : > { %2015 = sbr.rel (%p2476_p10) target bundleno = 3049 (0xbe9), region = 84 }
 0x95f   : > { %v2964_v7 = vld [vmem:[%s3615_s1 + $0x38] sm:$0xff]   ;;  %v3338_v15 = vmov 0.0   ;;  %v2965_v1 = vld [vmem:[%s3615_s1 + $0x30] sm:$0xff]   ;;  %vm3339_vm3 = vmmov 0   ;;  %v2966_v5 = vld [vmem:[%s3615_s1 + $0x28] sm:$0xff]   ;;  %v2123_v54 = vlaneseq  ;;  %s2485_s3 = sshll.u32 %s4397_s27, 7 }
 0x960   : > { %2523 = vmatprep.subr.bf16.mxu0 %v3338_v15  ;;  %2539 = vmatprep.mubr.msk.bf16.mxu0 %vm3339_vm3, %v3338_v15  ;;  %v2967_v24 = vld [vmem:[%s3615_s1 + $0x20] sm:$0xff]   ;;  %v2968_v27 = vld [vmem:[%s3615_s1 + $0x18] sm:$0xff]   ;;  %v2969_v47 = vld [vmem:[%s3615_s1 + $0x10] sm:$0xff]   ;;  %v2125_v32 = vstv %s2485_s3  ;;  %s2486_s19 = sshll.u32 %s4397_s27, 3  ;;  %v3340_v57 = vmov 0   ;;  %vm2152_vm5 = vcmask 7168  }
 0x961   : > { %2524 = vmatpush3.bf16.msra.mxu0 %v2964_v7  ;;  %v2970_v48 = vld [vmem:[%s3615_s1 + $0x8] sm:$0xff]   ;;  %v2971_v51 = vld [vmem:[%s3615_s1] sm:$0xff]   ;;  %v2016_v52 = vld [vmem:[#allocation3] sm:$0xff]  ;;  %v2124_v28 = vand.u32 127, %v2123_v54  ;;  %s2130_s22 = scalar_lea.vmem [#allocation5], %s2486_s19  ;;  %2963 = vset.pattern.permute.xlu0 %v3340_v57 }
 0x962   : > { %2525 = vmatprep.subr.bf16.mxu0 %v3338_v15  ;;  %v2017_v53 = vpack.c.bf16 %v2016_v52, %v2016_v52  ;;  %v2132_v58 = vld [vmem:[#allocation6] sm:$0xff]  ;;  %v2136_v45 = vld [vmem:[#allocation7] sm:$0xff] }
 0x963   : > { %v2126_v33 = vadd.s32 %v2125_v32, %v2124_v28 }
 0x965   : > { %2526 = vmatpush3.bf16.msra.mxu0 %v2965_v1  ;;  %vm2127_vm4 = vcmp.lt.s32.totalorder %v2126_v33, 256 }
 0x966   : > { %2527 = vmatprep.subr.bf16.mxu0 %v3338_v15 }
 0x969   : > { %2528 = vmatpush3.bf16.msra.mxu0 %v2966_v5 }
 0x96a   : > { %2529 = vmatprep.subr.bf16.mxu0 %v3338_v15 }
 0x96d   : > { %2530 = vmatpush3.bf16.msra.mxu0 %v2967_v24 }
 0x96e   : > { %2531 = vmatprep.subr.bf16.mxu0 %v3338_v15 }
 0x971   : > { %2532 = vmatpush3.bf16.msra.mxu0 %v2968_v27 }
 0x972   : > { %2533 = vmatprep.subr.bf16.mxu0 %v3338_v15 }
 0x975   : > { %2534 = vmatpush3.bf16.msra.mxu0 %v2969_v47 }
 0x976   : > { %2535 = vmatprep.subr.bf16.mxu0 %v3338_v15 }
 0x979   : > { %2536 = vmatpush3.bf16.msra.mxu0 %v2970_v48 }
 0x97a   : > { %2537 = vmatprep.subr.bf16.mxu0 %v3338_v15 }
 0x97d   : > { %2538 = vmatpush3.bf16.msra.mxu0 %v2971_v51 }
 0x980   : > { %2540 = vmatmul.mubr.bf16.vlgmr.msra.gmra.mxu0 %v2017_v53 }
 0xa40   : > { %v2116_v34 = vpop.f32.mrf.mxu0 }
 0xa41   : > { %v2128_v55 = vsel %vm2127_vm4, %v2116_v34, -inf }
 0xa42   : > { %2131 = vst [vmem:[%s2130_s22] sm:$0xff] %v2128_v55  ;;  %2133 = vmax.xlane.f32.xlu0 %v2128_v55  ;;  %v2541_v35 = vpop.f32.mrf.mxu0 }
 0xa44   : > { %v2119_v56 = vpop.f32.mrf.mxu0 }
 0xa46   : > { %v2542_v36 = vpop.f32.mrf.mxu0 }
 0xacb   : > { %v2134_v37 = vpop.xlane.xlu0 %2133 }
 0xacc   : > { %v2135_v59 = vmax.f32 %v2132_v58, %v2134_v37 }
 0xace   : > { %v2137_v23 = vsub.f32 %v2132_v58, %v2135_v59  ;;  %2154 = vst.msk [vmem:[#allocation6] sm:$0xff] %vm2152_vm5, %v2135_v59  ;;  %2143 = vperm.xlu0 %2963, %v2135_v59  }
 0xad0   : > { %v2138_v43 = vmul.f32 1.442695, %v2137_v23 }
 0xb49   : > { %v2144_v38 = vpop.permute.xlu0 %2143 }
 0xb4a   : > { %v2146_v39 = vsub.f32 %v2128_v55, %v2144_v38 }
 0xb4c   : > { %v2147_v41 = vmul.f32 1.442695, %v2146_v39 }
 0xb4e   : > { %2972 = vpow2.f32 %v2147_v41 }
 0xb4f   : > { %2974 = vpow2.f32 %v2138_v43 }
 0xb5b   : > { %v2973_v42 = vpop.eup %2972 }
 0xb5c   : > { %2149 = vadd.xlane.f32.xlu1 %v2973_v42  ;;  %v2975_v44 = vpop.eup %2974 }
 0xb5d   : > { %v2140_v46 = vmul.f32 %v2975_v44, %v2136_v45 }
 0xbe5   : > { %v2150_v30 = vpop.xlane.xlu1 %2149 }
 0xbe6   : > { %v2151_v50 = vadd.f32 %v2150_v30, %v2140_v46 }
 0xbe8   : > { %2153 = vst.msk [vmem:[#allocation7] sm:$0xff] %vm2152_vm5, %v2151_v50 }
 0xbe9 PF: > { %s4398_s0 = sld [smem:[#allocation31_spill]] }
 0xbef   : > { %p2487_p11 = scmp.ne.s32.totalorder %s4398_s0, 1 }
 0xbf0   : > { %s4399_s5 = sld [smem:[#allocation30_spill]] (!%p2487_p11) }
 0xbf1   : > { %2158 = sbr.rel (%p2487_p11) target bundleno = 3208 (0xc88), region = 88 }
 0xbf6   : > { %v2160_v21 = vld [vmem:[#allocation7] sm:$0xff]  ;;  %v3341_v60 = vmov 0   ;;  %v2159_v8 = vld [vmem:[#allocation6] sm:$0xff]  ;;  %s2488_s20 = sshll.u32 %s4399_s5, 3 }
 0xbf7   : > { %2976 = vset.pattern.permute.xlu0 %v3341_v60  ;;  %2977 = vlog2.f32 %v2160_v21  ;;  %s2165_s11 = scalar_lea.vmem [#allocation5], %s2488_s20 }
 0xbf8   : > { %v2166_v25 = vld [vmem:[%s2165_s11] sm:$0xff] }
 0xc04   : > { %v2978_v62 = vpop.eup %2977 }
 0xc05   : > { %v2162_v3 = vmul.f32 0.6931472, %v2978_v62 }
 0xc07   : > { %v2163_v31 = vadd.f32 %v2162_v3, %v2159_v8 }
 0xc09   : > { %2169 = vperm.xlu0 %2976, %v2163_v31  }
 0xc84   : > { %v2170_v14 = vpop.permute.xlu0 %2169 }
 0xc85   : > { %v2172_v22 = vsub.f32 %v2166_v25, %v2170_v14 }
 0xc87   : > { %2173 = vst [vmem:[%s459_s16] sm:$0xff] %v2172_v22 }
 0xc88 PF: > { %s3342_s1 = smov [#allocation20]   ;;  %s4400_s29 = sld [smem:[#allocation31_spill]] }
 0xc89   : > { %s4401_s10 = sld [smem:[#allocation30_spill]]  ;;  %s2200_s9 = sshll.u32 %s3342_s1, 4  ;;  %s2201_s9 = int_to_ptr.vmem [resolvable:$true] %s2200_s9 }
 0xc8a   : > { %s4402_s28 = sld [smem:[#allocation34_spill]]  ;;  %s3137_s13 = scalar_lea.vmem %s2201_s9, 128 }
 0xc8b   : > { %p3138_p7 = scmp.ne.s32.totalorder %s2201_s9, %s3137_s13  ;;  %p3144_p12 = scmp.lt.s32.totalorder %s2201_s9, %s2201_s9 }
 0xc8c   : > { %p3145_p2 = scmp.lt.s32.totalorder %s3137_s13, %s3137_s13 }
 0xc8e   : > { %p3146_p5 = por %p3145_p2, %p3144_p12 }
 0xc8f   : > { %s2182_s25 = smul.u32 %s4401_s10, %s4400_s29 }
 0xc90   : > { %p4403_p8 = scmp.ne.s32.totalorder %s4402_s28, 0 }
 0xc92   : > { %p3139_p9 = pnand %p3138_p7, %p4403_p8 }
 0xc94   : > { %p3140_p0 = pneg %p3139_p9 }
 0xc96   : > { %p3147_p13 = pnand %p3146_p5, %p3140_p0 }
 0xc98   : > { %3150 = shalt.err (!%p3147_p13)
}
 0xc99   : > { %s4404_s21 = sld [smem:[#allocation66_spill]]  ;;  %s2490_s3 = sshll.u32 %s2182_s25, 7 }
 0xc9a   : > { %s4405_s27 = sld [smem:[#allocation35_spill]]  ;;  %s2189_s19 = sshll.u32 %s459_s16, 4  ;;  %s2190_s19 = int_to_ptr.vmem [resolvable:$true] %s2189_s19 }
 0xc9b   : > { %s4406_s5 = sld [smem:[#allocation65_spill]]  ;;  %s2175_s11 = scalar_lea.sflag [#allocation10], %s457_s12 }
 0xc9c   : > { %s3161_s1 = scalar_lea.vmem %s2190_s19, 128  ;;  %s3343_s29 = smov [#allocation19]  }
 0xc9d   : > { %p3162_p3 = scmp.ne.s32.totalorder %s2190_s19, %s3161_s1  ;;  %s3165_s10 = sshll.u32 %s3343_s29, 4  ;;  %s3166_s10 = int_to_ptr.vmem [resolvable:$false] %s3165_s10 }
 0xc9e   : > { %s3167_s13 = scalar_lea.vmem %s3166_s10, 256  ;;  %p3168_p10 = scmp.lt.s32.totalorder %s2190_s19, %s3166_s10 }
 0xc9f   : > { %2567 = dma.vmem_to_hbm [thread:$0]  (%p4403_p8), %s2201_s9, 128, %s4404_s21, [#allocation21]  }
 0xca0   : > { %p4407_p1 = scmp.ne.s32.totalorder %s4405_s27, 0  ;;  %p3169_p11 = scmp.lt.s32.totalorder %s3167_s13, %s3161_s1 }
 0xca1   : > { %s2187_s20 = scalar_lea.hbm %s4406_s5, %s2490_s3 }
 0xca2   : > { %p3163_p4 = pnand %p3162_p3, %p4407_p1  ;;  %p3170_p7 = por %p3169_p11, %p3168_p10 }
 0xca4   : > { %p3164_p6 = pneg %p3163_p4 }
 0xca6   : > { %p3171_p9 = pnand %p3170_p7, %p3164_p6 }
 0xca8   : > { %3174 = shalt.err (!%p3171_p9)
}
 0xca9   : > { %s3175_s26 = scalar_lea.hbm %s2187_s20, 128  ;;  %s3179_s9 = scalar_lea.hbm %s4406_s5, 256 }
 0xcaa   : > { %p3176_p0 = scmp.ne.s32.totalorder %s2187_s20, %s3175_s26  ;;  %p3180_p5 = scmp.lt.s32.totalorder %s2187_s20, %s4406_s5 }
 0xcab   : > { %p3181_p13 = scmp.lt.s32.totalorder %s3179_s9, %s3175_s26 }
 0xcac   : > { %p3177_p12 = pnand %p3176_p0, %p4407_p1 }
 0xcad   : > { %p3182_p3 = por %p3181_p13, %p3180_p5 }
 0xcae   : > { %p3178_p2 = pneg %p3177_p12 }
 0xcb0   : > { %p3183_p4 = pnand %p3182_p3, %p3178_p2 }
 0xcb2   : > { %3186 = shalt.err (!%p3183_p4)
}
 0xcb3   : > { %2565 = dma.vmem_to_hbm [thread:$0]  (%p4407_p1), %s2190_s19, 128, %s2187_s20, %s2175_s11  }
 0xcb4   : > { %s3344_s8 = smov [#allocation22]  }
 0xcb5   : > { %s2211_s21 = sshll.u32 %s3344_s8, 4  ;;  %s2212_s21 = int_to_ptr.vmem [resolvable:$true] %s2211_s21 }
 0xcb6   : > { %s3187_s3 = scalar_lea.vmem %s2212_s21, 128  ;;  %p3194_p7 = scmp.lt.s32.totalorder %s2212_s21, %s2212_s21 }
 0xcb7   : > { %p3188_p6 = scmp.ne.s32.totalorder %s2212_s21, %s3187_s3  ;;  %p3195_p9 = scmp.lt.s32.totalorder %s3187_s3, %s3187_s3 }
 0xcb9   : > { %p3189_p10 = pnand %p3188_p6, %p4403_p8  ;;  %p3196_p0 = por %p3195_p9, %p3194_p7 }
 0xcbb   : > { %p3190_p11 = pneg %p3189_p10 }
 0xcbd   : > { %p3197_p12 = pnand %p3196_p0, %p3190_p11 }
 0xcbf   : > { %3200 = shalt.err (!%p3197_p12)
}
 0xcc0   : > { %s4408_s27 = sld [smem:[#allocation67_spill]] }
 0xcc6   : > { %2569 = dma.vmem_to_hbm [thread:$0]  (%p4403_p8), %s2212_s21, 128, %s4408_s27, [#allocation21]  }
 0xcc7   : > { %3272 = dma.done.wait (%p4403_p8), [#allocation21], 256  }
 0xcc8   : > { %3274 = vsyncadd (%p4403_p8), [#allocation21], 4294967040 }
 0xcc9 PF: > { %s4409_s19 = sld [smem:[#allocation29_spill]]  ;;  %p2614_p1 = scmp.ge.s32.totalorder %s3321_s23, 2 }
 0xcca   : > { %s4410_s20 = sld [smem:[#allocation36_spill]] }
 0xccf   : > { %s2231_s11 = sand.u32 1, %s4409_s19  }
 0xcd0   : > { %p4411_p2 = scmp.ne.s32.totalorder %s4410_s20, 0  ;;  %s2232_s1 = scalar_lea.sflag [#allocation10], %s2231_s11 }
 0xcd2   : > { %p2596_p5 = pnand %p2614_p1, %p4411_p2 }
 0xcd4   : > { %p2597_p13 = pneg %p2596_p5 }
 0xcd6   : > { %3276 = dma.done.wait (%p2597_p13), %s2232_s1, 128  }
 0xcd7   : > { %3278 = vsyncadd (%p2597_p13), %s2232_s1, 4294967168  ;;  %s31_s23 = sadd.s32 1, %s3321_s23   ;;  %s4412_s19 = sld [smem:[#allocation32_spill]] }
 0xcd8   : > { %p28_p3 = scmp.ge.s32.totalorder %s31_s23, 6   ;;  %s4413_s20 = sld [smem:[#allocation33_spill]] }
 0xcd9   : > { %s4414_s13 = smov %s3285_s14  ;;  %s4415_s14 = smov %s3289_s15 }
 0xcda   : > { %s4416_s15 = smov %s3578_s4  ;;  %s4417_s16 = smov %s3297_s17 }
 0xcdb   : > { %s4418_s17 = smov %s3301_s18  ;;  %s4419_s18 = smov %s3581_s6 }
 0xcdc   : > { %s4420_s21 = smov %s4423_s30  ;;  %s4421_s22 = smov %s4427_s24 }
 0xcdd   :  { %30 = sbr.rel (!%p28_p3) target bundleno = 24 (0x18), region = 148 }
 0xce2   :  { %2237 = vsyncpa [#allocation9], 1 }
 0xce3   :  { %2239 = vsyncpa [#allocation9 + $0x1], 1 }
 0xce4   :  { %2240 = vsyncpa [#allocation12], 1 }
 0xce5   :  { %2241 = vsyncpa [#allocation15], 1 }
 0xce6   :  { %2242 = vsyncpa [#allocation18], 1 }
 0xce7   :  { %2244 = vsyncpa [#allocation18 + $0x1], 1 }
 0xce8   :  { %2245 = vsyncpa [#allocation10], 1 }
 0xce9   :  { %2247 = vsyncpa [#allocation10 + $0x1], 1 }
 0xcea   :  { %2248 = vsyncpa [#allocation21], 1 }

</bundles_post_ra>
